<compile_context>
chip_gen: v7x
topology: tpu7x:2x2x1
jax: 0.10.0
libtpu: 0.0.40
codegen_flags: <defaults>
</compile_context>

<pallas_src>
import functools

import jax
import jax.numpy as jnp
import numpy as np
from jax import lax
from jax.experimental import pallas as pl
from jax.experimental.pallas import tpu as pltpu

LANE = 128


def _round_up(v, m):
    return (v + m - 1) // m * m


# ----------------------------- Pallas kernels ------------------------------

def _accumulate_3x3_taps(x_ph_ref, w_ref, acc_ref, *, stride, wq, mo):
    """3x3 conv as 9 shifted (mo x K) @ (K x TILE_CO) MXU matmuls, f32 accum.

    x_ph_ref : (stride*stride, Hq*Wq, K) bf16  phase-split, flattened, padded
    w_ref    : (9, K, TILE_CO)           bf16  tap-major weights
    acc_ref  : (mo, TILE_CO)             f32   VMEM accumulator scratch
    """
    for t in range(9):
        kh, kw = divmod(t, 3)
        phase = (kh % stride) * stride + (kw % stride)
        off = (kh // stride) * wq + (kw // stride)
        patch = x_ph_ref[phase, pl.ds(off, mo), :]
        d = jnp.dot(patch, w_ref[t], preferred_element_type=jnp.float32)
        if t == 0:
            acc_ref[...] = d
        else:
            acc_ref[...] += d


def _conv1_prelu_kernel(x_ph_ref, w_ref, alpha_ref, o_ref, acc_ref, *, stride, wq):
    # conv1 3x3 / stride 1 / pad 1 (BN1 folded into the input) + PReLU(depth)
    mo = o_ref.shape[0]
    _accumulate_3x3_taps(x_ph_ref, w_ref, acc_ref, stride=stride, wq=wq, mo=mo)
    acc = acc_ref[...]
    o_ref[...] = jnp.where(acc >= 0.0, acc, acc * alpha_ref[...]).astype(o_ref.dtype)


def _conv2_identity_sc_kernel(h_ph_ref, w2_ref, s2_ref, b2_ref, sc_ref,
                              o_ref, acc_ref, *, stride, wq):
    # conv2 3x3 / stride / pad 1 + BN2 + MaxPool2d(1, stride) shortcut + add
    mo = o_ref.shape[0]
    _accumulate_3x3_taps(h_ph_ref, w2_ref, acc_ref, stride=stride, wq=wq, mo=mo)
    o_ref[...] = acc_ref[...] * s2_ref[...] + b2_ref[...] + sc_ref[...]


def _conv2_conv_sc_kernel(h_ph_ref, w2_ref, s2_ref, b2_ref,
                          xsc_ref, wsc_ref, ssc_ref, bsc_ref,
                          o_ref, acc_ref, *, stride, wq):
    # conv2 3x3 / stride / pad 1 + BN2, plus 1x1-conv(stride)+BN shortcut, + add
    mo = o_ref.shape[0]
    _accumulate_3x3_taps(h_ph_ref, w2_ref, acc_ref, stride=stride, wq=wq, mo=mo)
    res = acc_ref[...] * s2_ref[...] + b2_ref[...]
    sc = jnp.dot(xsc_ref[...], wsc_ref[...], preferred_element_type=jnp.float32)
    sc = sc * ssc_ref[...] + bsc_ref[...]
    o_ref[...] = res + sc


# ------------------------------ layout helpers ------------------------------

def _phase_split_flat(xp, stride, ho, wo):
    """Split a zero-padded NHWC tensor into stride**2 phases and flatten spatial.

    Returns (N, stride*stride, Hq*Wq, C) plus (Hq, Wq).  Phase (r, c), flat row
    i*Wq + j, holds xp[:, stride*i + r, stride*j + c, :] (zero outside), so a
    3x3/stride-s conv tap (kh, kw) becomes a contiguous row offset
    (kh//s)*Wq + (kw//s) into phase (kh % s, kw % s).  Output rows follow the
    same flat layout with Wq - Wo discardable wrap columns per row.
    """
    n, hp, wp, c = xp.shape
    s = stride
    e = 2 // s                      # largest tap offset inside a phase
    wq = wo + e
    hq = ho + e + 1                 # +1 so flat-row wraparound reads stay in bounds
    xp2 = jnp.pad(xp, ((0, 0), (0, hq * s - hp), (0, wq * s - wp), (0, 0)))
    x6 = xp2.reshape(n, hq, s, wq, s, c).transpose(0, 2, 4, 1, 3, 5)
    return x6.reshape(n, s * s, hq * wq, c), hq, wq


# ------------------------------- parameters --------------------------------

def _bn_params(key, c):
    k1, k2, k3, k4 = jax.random.split(key, 4)
    gamma = 1.0 + 0.1 * jax.random.normal(k1, (c,), jnp.float32)
    beta = 0.1 * jax.random.normal(k2, (c,), jnp.float32)
    mean = 0.1 * jax.random.normal(k3, (c,), jnp.float32)
    var = jnp.abs(jax.random.normal(k4, (c,), jnp.float32)) + 0.5
    eps = 1e-5
    scale = gamma / jnp.sqrt(var + eps)
    bias = beta - mean * scale
    return scale, bias


def init_params(key, in_channel, depth):
    ks = jax.random.split(key, 7)
    params = {
        "bn1": _bn_params(ks[0], in_channel),
        # HWIO weight layouts (match ('NHWC','HWIO','NHWC') conv dnums)
        "w1": 0.1 * jax.random.normal(ks[1], (3, 3, in_channel, depth), jnp.float32),
        "prelu": 0.25 + 0.05 * jax.random.normal(ks[2], (depth,), jnp.float32),
        "w2": 0.1 * jax.random.normal(ks[3], (3, 3, depth, depth), jnp.float32),
        "bn2": _bn_params(ks[4], depth),
    }
    if in_channel != depth:
        params["wsc"] = 0.1 * jax.random.normal(
            ks[5], (1, 1, in_channel, depth), jnp.float32)
        params["bnsc"] = _bn_params(ks[6], depth)
    return params


# -------------------------------- forward ----------------------------------

def bottleneck_ir_forward(x_nchw, params, in_channel, depth, stride):
    x = jnp.transpose(x_nchw, (0, 2, 3, 1)).astype(jnp.float32)  # NCHW -> NHWC
    N, H, W, C = x.shape
    assert C == in_channel

    d_pad = _round_up(depth, LANE)                 # lane-dense output channels
    tile_co = 256 if d_pad % 256 == 0 else 128
    n_co = d_pad // tile_co
    mosaic = pltpu.CompilerParams(
        dimension_semantics=("parallel", "parallel"),
        vmem_limit_bytes=32 * 1024 * 1024)

    # ---- BN1 folded into the pre-conv affine (fuses with pad/cast in XLA) ----
    s1, b1 = params["bn1"]
    xb = (x * s1 + b1).astype(jnp.bfloat16)
    xb_p = jnp.pad(xb, ((0, 0), (1, 1), (1, 1), (0, 0)))
    xb_ph, hq1, wq1 = _phase_split_flat(xb_p, 1, H, W)         # (N, 1, hq1*wq1, C)
    mi1, mo1 = hq1 * wq1, H * wq1

    w1 = jnp.pad(params["w1"], ((0, 0), (0, 0), (0, 0), (0, d_pad - depth)))
    w1 = w1.reshape(9, C, d_pad).astype(jnp.bfloat16)
    alpha = jnp.pad(params["prelu"], (0, d_pad - depth)).reshape(1, d_pad)
    alpha = alpha.astype(jnp.float32)

    # ---- conv1 3x3/s1/p1 + PReLU ----
    h_flat = pl.pallas_call(
        functools.partial(_conv1_prelu_kernel, stride=1, wq=wq1),
        grid=(N, n_co),
        in_specs=[
            pl.BlockSpec((None, 1, mi1, C), lambda n, co: (n, 0, 0, 0)),
            pl.BlockSpec((9, C, tile_co), lambda n, co: (0, 0, co)),
            pl.BlockSpec((1, tile_co), lambda n, co: (0, co)),
        ],
        out_specs=pl.BlockSpec((None, mo1, tile_co), lambda n, co: (n, 0, co)),
        out_shape=jax.ShapeDtypeStruct((N, mo1, d_pad), jnp.bfloat16),
        scratch_shapes=[pltpu.VMEM((mo1, tile_co), jnp.float32)],
        compiler_params=mosaic,
        cost_estimate=pl.CostEstimate(
            flops=2 * N * mo1 * 9 * C * d_pad, transcendentals=0,
            bytes_accessed=int(xb_ph.size * 2 + w1.size * 2
                               + alpha.size * 4 + N * mo1 * d_pad * 2)),
    )(xb_ph, w1, alpha)

    # drop the wrap columns of the flat layout, zero-pad for conv2
    h = h_flat.reshape(N, H, wq1, d_pad)[:, :, :W, :]
    h_p = jnp.pad(h, ((0, 0), (1, 1), (1, 1), (0, 0)))
    Ho = (H - 1) // stride + 1
    Wo = (W - 1) // stride + 1
    h_ph, hq2, wq2 = _phase_split_flat(h_p, stride, Ho, Wo)    # (N, s*s, hq2*wq2, d_pad)
    mi2, mo2 = hq2 * wq2, Ho * wq2

    w2 = jnp.pad(params["w2"],
                 ((0, 0), (0, 0), (0, d_pad - depth), (0, d_pad - depth)))
    w2 = w2.reshape(9, d_pad, d_pad).astype(jnp.bfloat16)
    s2, b2 = params["bn2"]
    s2 = jnp.pad(s2, (0, d_pad - depth)).reshape(1, d_pad)
    b2 = jnp.pad(b2, (0, d_pad - depth)).reshape(1, d_pad)

    # shortcut operates on the raw (pre-BN1) input, stride-s subsampled
    x_sub = x[:, ::stride, ::stride, :]                        # (N, Ho, Wo, C)
    x_sub = jnp.pad(x_sub, ((0, 0), (0, 0), (0, wq2 - Wo), (0, 0)))

    common_in_specs = [
        pl.BlockSpec((None, stride * stride, mi2, d_pad), lambda n, co: (n, 0, 0, 0)),
        pl.BlockSpec((9, d_pad, tile_co), lambda n, co: (0, 0, co)),
        pl.BlockSpec((1, tile_co), lambda n, co: (0, co)),
        pl.BlockSpec((1, tile_co), lambda n, co: (0, co)),
    ]
    out_spec = pl.BlockSpec((None, mo2, tile_co), lambda n, co: (n, 0, co))
    out_shape = jax.ShapeDtypeStruct((N, mo2, d_pad), jnp.float32)
    scratch = [pltpu.VMEM((mo2, tile_co), jnp.float32)]
    flops2 = 2 * N * mo2 * 9 * d_pad * d_pad + 2 * N * mo2 * C * d_pad
    bytes2 = int(h_ph.size * 2 + w2.size * 2 + N * mo2 * d_pad * 4 + N * mo2 * C * 4)

    if in_channel == depth:
        # shortcut = MaxPool2d(kernel=1, stride) == strided subsample (f32 add)
        sc = jnp.pad(x_sub, ((0, 0), (0, 0), (0, 0), (0, d_pad - depth)))
        sc = sc.reshape(N, mo2, d_pad).astype(jnp.float32)
        out_flat = pl.pallas_call(
            functools.partial(_conv2_identity_sc_kernel, stride=stride, wq=wq2),
            grid=(N, n_co),
            in_specs=common_in_specs + [
                pl.BlockSpec((None, mo2, tile_co), lambda n, co: (n, 0, co)),
            ],
            out_specs=out_spec, out_shape=out_shape, scratch_shapes=scratch,
            compiler_params=mosaic,
            cost_estimate=pl.CostEstimate(flops=flops2, transcendentals=0,
                                          bytes_accessed=bytes2),
        )(h_ph, w2, s2, b2, sc)
    else:
        # shortcut = Conv2d 1x1 / stride (no bias) + BN
        xsc = x_sub.reshape(N, mo2, C).astype(jnp.bfloat16)
        wsc = jnp.pad(params["wsc"].reshape(C, depth),
                      ((0, 0), (0, d_pad - depth))).astype(jnp.bfloat16)
        ssc, bsc = params["bnsc"]
        ssc = jnp.pad(ssc, (0, d_pad - depth)).reshape(1, d_pad)
        bsc = jnp.pad(bsc, (0, d_pad - depth)).reshape(1, d_pad)
        out_flat = pl.pallas_call(
            functools.partial(_conv2_conv_sc_kernel, stride=stride, wq=wq2),
            grid=(N, n_co),
            in_specs=common_in_specs + [
                pl.BlockSpec((None, mo2, C), lambda n, co: (n, 0, 0)),
                pl.BlockSpec((C, tile_co), lambda n, co: (0, co)),
                pl.BlockSpec((1, tile_co), lambda n, co: (0, co)),
                pl.BlockSpec((1, tile_co), lambda n, co: (0, co)),
            ],
            out_specs=out_spec, out_shape=out_shape, scratch_shapes=scratch,
            compiler_params=mosaic,
            cost_estimate=pl.CostEstimate(flops=flops2, transcendentals=0,
                                          bytes_accessed=bytes2),
        )(h_ph, w2, s2, b2, xsc, wsc, ssc, bsc)

    out = out_flat.reshape(N, Ho, wq2, d_pad)[:, :, :Wo, :depth]
    return jnp.transpose(out, (0, 3, 1, 2))                    # NHWC -> NCHW


# ------------------------ pure-JAX reference (check) ------------------------

def reference_forward(x_nchw, params, in_channel, depth, stride):
    x = jnp.transpose(x_nchw, (0, 2, 3, 1)).astype(jnp.float32)
    dn = ("NHWC", "HWIO", "NHWC")
    s1, b1 = params["bn1"]
    xb = x * s1 + b1
    h = lax.conv_general_dilated(xb, params["w1"], (1, 1),
                                 ((1, 1), (1, 1)), dimension_numbers=dn)
    h = jnp.where(h >= 0, h, h * params["prelu"])
    r = lax.conv_general_dilated(h, params["w2"], (stride, stride),
                                 ((1, 1), (1, 1)), dimension_numbers=dn)
    s2, b2 = params["bn2"]
    r = r * s2 + b2
    if in_channel == depth:
        sc = x[:, ::stride, ::stride, :]
    else:
        sc = lax.conv_general_dilated(x, params["wsc"], (stride, stride),
                                      ((0, 0), (0, 0)), dimension_numbers=dn)
        ssc, bsc = params["bnsc"]
        sc = sc * ssc + bsc
    return jnp.transpose(r + sc, (0, 3, 1, 2))


# ----------------------------------- main -----------------------------------

if __name__ == "__main__":
    key = jax.random.PRNGKey(0)
    kx1, kp1, kx2, kp2 = jax.random.split(key, 4)

    # Tolerances: the Pallas path uses bf16 MXU inputs (f32 accumulation), the
    # reference is full f32 -> allow ~1e-2-level relative error.
    RTOL, ATOL = 2e-2, 5e-2

    # Case 1: in_channel != depth  -> conv+BN shortcut
    in_ch, depth, stride = 4, 8, 2
    x1 = jax.random.normal(kx1, (2, in_ch, 16, 16), jnp.float32)
    p1 = init_params(kp1, in_ch, depth)
    out1 = bottleneck_ir_forward(x1, p1, in_ch, depth, stride)
    out1 = jax.block_until_ready(out1)
    ref1 = reference_forward(x1, p1, in_ch, depth, stride)
    np.testing.assert_allclose(np.asarray(out1), np.asarray(ref1),
                               rtol=RTOL, atol=ATOL)
    assert out1.shape == (2, depth, 8, 8)

    # Case 2: in_channel == depth -> MaxPool2d(1, stride) identity shortcut
    in_ch2, depth2, stride2 = 8, 8, 2
    x2 = jax.random.normal(kx2, (2, in_ch2, 16, 16), jnp.float32)
    p2 = init_params(kp2, in_ch2, depth2)
    out2 = bottleneck_ir_forward(x2, p2, in_ch2, depth2, stride2)
    out2 = jax.block_until_ready(out2)
    ref2 = reference_forward(x2, p2, in_ch2, depth2, stride2)
    np.testing.assert_allclose(np.asarray(out2), np.asarray(ref2),
                               rtol=RTOL, atol=ATOL)
    assert out2.shape == (2, depth2, 8, 8)

    print("KERNEL_OK")
</pallas_src>

<mosaic_0001>
module attributes {stable_mosaic.version = 11 : i64} {
  func.func @_conv1_prelu_kernel(%arg0: i32, %arg1: i32, %arg2: memref<1x1x342x4xbf16, #tpu.memory_space<vmem>>, %arg3: memref<9x4x128xbf16, #tpu.memory_space<vmem>>, %arg4: memref<1x128xf32, #tpu.memory_space<vmem>>, %arg5: memref<1x288x128xbf16, #tpu.memory_space<vmem>>, %arg6: memref<288x128xf32, #tpu.memory_space<vmem>>) attributes {dimension_semantics = [#tpu.dimension_semantics<parallel>, #tpu.dimension_semantics<parallel>], iteration_bounds = array<i64: 2, 1>, scalar_prefetch = 0 : i64, scratch_operands = 1 : i64, tpu.core_type = #tpu.core_type<tc>, window_params = [{transform_indices = @transform_0, window_bounds = array<i64: 1, 1, 342, 4>}, {transform_indices = @transform_1, window_bounds = array<i64: 9, 4, 128>}, {transform_indices = @transform_2, window_bounds = array<i64: 1, 128>}, {transform_indices = @transform_3, window_bounds = array<i64: 1, 288, 128>}]} {
    %c0 = arith.constant 0 : index
    %c0_0 = arith.constant 0 : index
    %c0_1 = arith.constant 0 : index
    %c0_2 = arith.constant 0 : index
    %0 = vector.load %arg2[%c0, %c0_0, %c0_1, %c0_2] : memref<1x1x342x4xbf16, #tpu.memory_space<vmem>>, vector<1x1x288x4xbf16>
    %1 = vector.shape_cast %0 : vector<1x1x288x4xbf16> to vector<288x4xbf16>
    %c0_3 = arith.constant 0 : index
    %c0_4 = arith.constant 0 : index
    %c0_5 = arith.constant 0 : index
    %2 = vector.load %arg3[%c0_3, %c0_4, %c0_5] : memref<9x4x128xbf16, #tpu.memory_space<vmem>>, vector<1x4x128xbf16>
    %3 = vector.shape_cast %2 : vector<1x4x128xbf16> to vector<4x128xbf16>
    %cst = arith.constant dense<0.000000e+00> : vector<288x128xf32>
    %4 = tpu.matmul %1, %3, %cst {dimension_numbers = #tpu.dot_dimension_numbers<[1], [0], [0], [1], [0, 0, 1, 1], [], []>} : vector<288x4xbf16>, vector<4x128xbf16>, vector<288x128xf32> -> vector<288x128xf32>
    %c0_6 = arith.constant 0 : index
    %c0_7 = arith.constant 0 : index
    %5 = vector.load %arg6[%c0_6, %c0_7] : memref<288x128xf32, #tpu.memory_space<vmem>>, vector<288x128xf32>
    tpu.vector_store %arg6[%c0_6, %c0_7], %4 {strides = array<i32>} : memref<288x128xf32, #tpu.memory_space<vmem>>, vector<288x128xf32>,
    %c0_8 = arith.constant 0 : index
    %c0_9 = arith.constant 0 : index
    %c1 = arith.constant 1 : index
    %c0_10 = arith.constant 0 : index
    %6 = vector.load %arg2[%c0_8, %c0_9, %c1, %c0_10] : memref<1x1x342x4xbf16, #tpu.memory_space<vmem>>, vector<1x1x288x4xbf16>
    %7 = vector.shape_cast %6 : vector<1x1x288x4xbf16> to vector<288x4xbf16>
    %c1_11 = arith.constant 1 : index
    %c0_12 = arith.constant 0 : index
    %c0_13 = arith.constant 0 : index
    %8 = vector.load %arg3[%c1_11, %c0_12, %c0_13] : memref<9x4x128xbf16, #tpu.memory_space<vmem>>, vector<1x4x128xbf16>
    %9 = vector.shape_cast %8 : vector<1x4x128xbf16> to vector<4x128xbf16>
    %cst_14 = arith.constant dense<0.000000e+00> : vector<288x128xf32>
    %10 = tpu.matmul %7, %9, %cst_14 {dimension_numbers = #tpu.dot_dimension_numbers<[1], [0], [0], [1], [0, 0, 1, 1], [], []>} : vector<288x4xbf16>, vector<4x128xbf16>, vector<288x128xf32> -> vector<288x128xf32>
    %c0_15 = arith.constant 0 : index
    %c0_16 = arith.constant 0 : index
    %11 = vector.load %arg6[%c0_15, %c0_16] : memref<288x128xf32, #tpu.memory_space<vmem>>, vector<288x128xf32>
    %12 = arith.addf %11, %10 : vector<288x128xf32>
    %c0_17 = arith.constant 0 : index
    %c0_18 = arith.constant 0 : index
    %13 = vector.load %arg6[%c0_17, %c0_18] : memref<288x128xf32, #tpu.memory_space<vmem>>, vector<288x128xf32>
    tpu.vector_store %arg6[%c0_17, %c0_18], %12 {strides = array<i32>} : memref<288x128xf32, #tpu.memory_space<vmem>>, vector<288x128xf32>,
    %c0_19 = arith.constant 0 : index
    %c0_20 = arith.constant 0 : index
    %c2 = arith.constant 2 : index
    %c0_21 = arith.constant 0 : index
    %14 = vector.load %arg2[%c0_19, %c0_20, %c2, %c0_21] : memref<1x1x342x4xbf16, #tpu.memory_space<vmem>>, vector<1x1x288x4xbf16>
    %15 = vector.shape_cast %14 : vector<1x1x288x4xbf16> to vector<288x4xbf16>
    %c2_22 = arith.constant 2 : index
    %c0_23 = arith.constant 0 : index
    %c0_24 = arith.constant 0 : index
    %16 = vector.load %arg3[%c2_22, %c0_23, %c0_24] : memref<9x4x128xbf16, #tpu.memory_space<vmem>>, vector<1x4x128xbf16>
    %17 = vector.shape_cast %16 : vector<1x4x128xbf16> to vector<4x128xbf16>
    %cst_25 = arith.constant dense<0.000000e+00> : vector<288x128xf32>
    %18 = tpu.matmul %15, %17, %cst_25 {dimension_numbers = #tpu.dot_dimension_numbers<[1], [0], [0], [1], [0, 0, 1, 1], [], []>} : vector<288x4xbf16>, vector<4x128xbf16>, vector<288x128xf32> -> vector<288x128xf32>
    %c0_26 = arith.constant 0 : index
    %c0_27 = arith.constant 0 : index
    %19 = vector.load %arg6[%c0_26, %c0_27] : memref<288x128xf32, #tpu.memory_space<vmem>>, vector<288x128xf32>
    %20 = arith.addf %19, %18 : vector<288x128xf32>
    %c0_28 = arith.constant 0 : index
    %c0_29 = arith.constant 0 : index
    %21 = vector.load %arg6[%c0_28, %c0_29] : memref<288x128xf32, #tpu.memory_space<vmem>>, vector<288x128xf32>
    tpu.vector_store %arg6[%c0_28, %c0_29], %20 {strides = array<i32>} : memref<288x128xf32, #tpu.memory_space<vmem>>, vector<288x128xf32>,
    %c0_30 = arith.constant 0 : index
    %c0_31 = arith.constant 0 : index
    %c18 = arith.constant 18 : index
    %c0_32 = arith.constant 0 : index
    %22 = vector.load %arg2[%c0_30, %c0_31, %c18, %c0_32] : memref<1x1x342x4xbf16, #tpu.memory_space<vmem>>, vector<1x1x288x4xbf16>
    %23 = vector.shape_cast %22 : vector<1x1x288x4xbf16> to vector<288x4xbf16>
    %c3 = arith.constant 3 : index
    %c0_33 = arith.constant 0 : index
    %c0_34 = arith.constant 0 : index
    %24 = vector.load %arg3[%c3, %c0_33, %c0_34] : memref<9x4x128xbf16, #tpu.memory_space<vmem>>, vector<1x4x128xbf16>
    %25 = vector.shape_cast %24 : vector<1x4x128xbf16> to vector<4x128xbf16>
    %cst_35 = arith.constant dense<0.000000e+00> : vector<288x128xf32>
    %26 = tpu.matmul %23, %25, %cst_35 {dimension_numbers = #tpu.dot_dimension_numbers<[1], [0], [0], [1], [0, 0, 1, 1], [], []>} : vector<288x4xbf16>, vector<4x128xbf16>, vector<288x128xf32> -> vector<288x128xf32>
    %c0_36 = arith.constant 0 : index
    %c0_37 = arith.constant 0 : index
    %27 = vector.load %arg6[%c0_36, %c0_37] : memref<288x128xf32, #tpu.memory_space<vmem>>, vector<288x128xf32>
    %28 = arith.addf %27, %26 : vector<288x128xf32>
    %c0_38 = arith.constant 0 : index
    %c0_39 = arith.constant 0 : index
    %29 = vector.load %arg6[%c0_38, %c0_39] : memref<288x128xf32, #tpu.memory_space<vmem>>, vector<288x128xf32>
    tpu.vector_store %arg6[%c0_38, %c0_39], %28 {strides = array<i32>} : memref<288x128xf32, #tpu.memory_space<vmem>>, vector<288x128xf32>,
    %c0_40 = arith.constant 0 : index
    %c0_41 = arith.constant 0 : index
    %c19 = arith.constant 19 : index
    %c0_42 = arith.constant 0 : index
    %30 = vector.load %arg2[%c0_40, %c0_41, %c19, %c0_42] : memref<1x1x342x4xbf16, #tpu.memory_space<vmem>>, vector<1x1x288x4xbf16>
    %31 = vector.shape_cast %30 : vector<1x1x288x4xbf16> to vector<288x4xbf16>
    %c4 = arith.constant 4 : index
    %c0_43 = arith.constant 0 : index
    %c0_44 = arith.constant 0 : index
    %32 = vector.load %arg3[%c4, %c0_43, %c0_44] : memref<9x4x128xbf16, #tpu.memory_space<vmem>>, vector<1x4x128xbf16>
    %33 = vector.shape_cast %32 : vector<1x4x128xbf16> to vector<4x128xbf16>
    %cst_45 = arith.constant dense<0.000000e+00> : vector<288x128xf32>
    %34 = tpu.matmul %31, %33, %cst_45 {dimension_numbers = #tpu.dot_dimension_numbers<[1], [0], [0], [1], [0, 0, 1, 1], [], []>} : vector<288x4xbf16>, vector<4x128xbf16>, vector<288x128xf32> -> vector<288x128xf32>
    %c0_46 = arith.constant 0 : index
    %c0_47 = arith.constant 0 : index
    %35 = vector.load %arg6[%c0_46, %c0_47] : memref<288x128xf32, #tpu.memory_space<vmem>>, vector<288x128xf32>
    %36 = arith.addf %35, %34 : vector<288x128xf32>
    %c0_48 = arith.constant 0 : index
    %c0_49 = arith.constant 0 : index
    %37 = vector.load %arg6[%c0_48, %c0_49] : memref<288x128xf32, #tpu.memory_space<vmem>>, vector<288x128xf32>
    tpu.vector_store %arg6[%c0_48, %c0_49], %36 {strides = array<i32>} : memref<288x128xf32, #tpu.memory_space<vmem>>, vector<288x128xf32>,
    %c0_50 = arith.constant 0 : index
    %c0_51 = arith.constant 0 : index
    %c20 = arith.constant 20 : index
    %c0_52 = arith.constant 0 : index
    %38 = vector.load %arg2[%c0_50, %c0_51, %c20, %c0_52] : memref<1x1x342x4xbf16, #tpu.memory_space<vmem>>, vector<1x1x288x4xbf16>
    %39 = vector.shape_cast %38 : vector<1x1x288x4xbf16> to vector<288x4xbf16>
    %c5 = arith.constant 5 : index
    %c0_53 = arith.constant 0 : index
    %c0_54 = arith.constant 0 : index
    %40 = vector.load %arg3[%c5, %c0_53, %c0_54] : memref<9x4x128xbf16, #tpu.memory_space<vmem>>, vector<1x4x128xbf16>
    %41 = vector.shape_cast %40 : vector<1x4x128xbf16> to vector<4x128xbf16>
    %cst_55 = arith.constant dense<0.000000e+00> : vector<288x128xf32>
    %42 = tpu.matmul %39, %41, %cst_55 {dimension_numbers = #tpu.dot_dimension_numbers<[1], [0], [0], [1], [0, 0, 1, 1], [], []>} : vector<288x4xbf16>, vector<4x128xbf16>, vector<288x128xf32> -> vector<288x128xf32>
    %c0_56 = arith.constant 0 : index
    %c0_57 = arith.constant 0 : index
    %43 = vector.load %arg6[%c0_56, %c0_57] : memref<288x128xf32, #tpu.memory_space<vmem>>, vector<288x128xf32>
    %44 = arith.addf %43, %42 : vector<288x128xf32>
    %c0_58 = arith.constant 0 : index
    %c0_59 = arith.constant 0 : index
    %45 = vector.load %arg6[%c0_58, %c0_59] : memref<288x128xf32, #tpu.memory_space<vmem>>, vector<288x128xf32>
    tpu.vector_store %arg6[%c0_58, %c0_59], %44 {strides = array<i32>} : memref<288x128xf32, #tpu.memory_space<vmem>>, vector<288x128xf32>,
    %c0_60 = arith.constant 0 : index
    %c0_61 = arith.constant 0 : index
    %c36 = arith.constant 36 : index
    %c0_62 = arith.constant 0 : index
    %46 = vector.load %arg2[%c0_60, %c0_61, %c36, %c0_62] : memref<1x1x342x4xbf16, #tpu.memory_space<vmem>>, vector<1x1x288x4xbf16>
    %47 = vector.shape_cast %46 : vector<1x1x288x4xbf16> to vector<288x4xbf16>
    %c6 = arith.constant 6 : index
    %c0_63 = arith.constant 0 : index
    %c0_64 = arith.constant 0 : index
    %48 = vector.load %arg3[%c6, %c0_63, %c0_64] : memref<9x4x128xbf16, #tpu.memory_space<vmem>>, vector<1x4x128xbf16>
    %49 = vector.shape_cast %48 : vector<1x4x128xbf16> to vector<4x128xbf16>
    %cst_65 = arith.constant dense<0.000000e+00> : vector<288x128xf32>
    %50 = tpu.matmul %47, %49, %cst_65 {dimension_numbers = #tpu.dot_dimension_numbers<[1], [0], [0], [1], [0, 0, 1, 1], [], []>} : vector<288x4xbf16>, vector<4x128xbf16>, vector<288x128xf32> -> vector<288x128xf32>
    %c0_66 = arith.constant 0 : index
    %c0_67 = arith.constant 0 : index
    %51 = vector.load %arg6[%c0_66, %c0_67] : memref<288x128xf32, #tpu.memory_space<vmem>>, vector<288x128xf32>
    %52 = arith.addf %51, %50 : vector<288x128xf32>
    %c0_68 = arith.constant 0 : index
    %c0_69 = arith.constant 0 : index
    %53 = vector.load %arg6[%c0_68, %c0_69] : memref<288x128xf32, #tpu.memory_space<vmem>>, vector<288x128xf32>
    tpu.vector_store %arg6[%c0_68, %c0_69], %52 {strides = array<i32>} : memref<288x128xf32, #tpu.memory_space<vmem>>, vector<288x128xf32>,
    %c0_70 = arith.constant 0 : index
    %c0_71 = arith.constant 0 : index
    %c37 = arith.constant 37 : index
    %c0_72 = arith.constant 0 : index
    %54 = vector.load %arg2[%c0_70, %c0_71, %c37, %c0_72] : memref<1x1x342x4xbf16, #tpu.memory_space<vmem>>, vector<1x1x288x4xbf16>
    %55 = vector.shape_cast %54 : vector<1x1x288x4xbf16> to vector<288x4xbf16>
    %c7 = arith.constant 7 : index
    %c0_73 = arith.constant 0 : index
    %c0_74 = arith.constant 0 : index
    %56 = vector.load %arg3[%c7, %c0_73, %c0_74] : memref<9x4x128xbf16, #tpu.memory_space<vmem>>, vector<1x4x128xbf16>
    %57 = vector.shape_cast %56 : vector<1x4x128xbf16> to vector<4x128xbf16>
    %cst_75 = arith.constant dense<0.000000e+00> : vector<288x128xf32>
    %58 = tpu.matmul %55, %57, %cst_75 {dimension_numbers = #tpu.dot_dimension_numbers<[1], [0], [0], [1], [0, 0, 1, 1], [], []>} : vector<288x4xbf16>, vector<4x128xbf16>, vector<288x128xf32> -> vector<288x128xf32>
    %c0_76 = arith.constant 0 : index
    %c0_77 = arith.constant 0 : index
    %59 = vector.load %arg6[%c0_76, %c0_77] : memref<288x128xf32, #tpu.memory_space<vmem>>, vector<288x128xf32>
    %60 = arith.addf %59, %58 : vector<288x128xf32>
    %c0_78 = arith.constant 0 : index
    %c0_79 = arith.constant 0 : index
    %61 = vector.load %arg6[%c0_78, %c0_79] : memref<288x128xf32, #tpu.memory_space<vmem>>, vector<288x128xf32>
    tpu.vector_store %arg6[%c0_78, %c0_79], %60 {strides = array<i32>} : memref<288x128xf32, #tpu.memory_space<vmem>>, vector<288x128xf32>,
    %c0_80 = arith.constant 0 : index
    %c0_81 = arith.constant 0 : index
    %c38 = arith.constant 38 : index
    %c0_82 = arith.constant 0 : index
    %62 = vector.load %arg2[%c0_80, %c0_81, %c38, %c0_82] : memref<1x1x342x4xbf16, #tpu.memory_space<vmem>>, vector<1x1x288x4xbf16>
    %63 = vector.shape_cast %62 : vector<1x1x288x4xbf16> to vector<288x4xbf16>
    %c8 = arith.constant 8 : index
    %c0_83 = arith.constant 0 : index
    %c0_84 = arith.constant 0 : index
    %64 = vector.load %arg3[%c8, %c0_83, %c0_84] : memref<9x4x128xbf16, #tpu.memory_space<vmem>>, vector<1x4x128xbf16>
    %65 = vector.shape_cast %64 : vector<1x4x128xbf16> to vector<4x128xbf16>
    %cst_85 = arith.constant dense<0.000000e+00> : vector<288x128xf32>
    %66 = tpu.matmul %63, %65, %cst_85 {dimension_numbers = #tpu.dot_dimension_numbers<[1], [0], [0], [1], [0, 0, 1, 1], [], []>} : vector<288x4xbf16>, vector<4x128xbf16>, vector<288x128xf32> -> vector<288x128xf32>
    %c0_86 = arith.constant 0 : index
    %c0_87 = arith.constant 0 : index
    %67 = vector.load %arg6[%c0_86, %c0_87] : memref<288x128xf32, #tpu.memory_space<vmem>>, vector<288x128xf32>
    %68 = arith.addf %67, %66 : vector<288x128xf32>
    %c0_88 = arith.constant 0 : index
    %c0_89 = arith.constant 0 : index
    %69 = vector.load %arg6[%c0_88, %c0_89] : memref<288x128xf32, #tpu.memory_space<vmem>>, vector<288x128xf32>
    tpu.vector_store %arg6[%c0_88, %c0_89], %68 {strides = array<i32>} : memref<288x128xf32, #tpu.memory_space<vmem>>, vector<288x128xf32>,
    %c0_90 = arith.constant 0 : index
    %c0_91 = arith.constant 0 : index
    %70 = vector.load %arg6[%c0_90, %c0_91] : memref<288x128xf32, #tpu.memory_space<vmem>>, vector<288x128xf32>
    %cst_92 = arith.constant 0.000000e+00 : f32
    %71 = vector.broadcast %cst_92 : f32 to vector<288x128xf32>
    %72 = arith.cmpf oge, %70, %71 : vector<288x128xf32>
    %c0_93 = arith.constant 0 : index
    %c0_94 = arith.constant 0 : index
    %73 = vector.load %arg4[%c0_93, %c0_94] : memref<1x128xf32, #tpu.memory_space<vmem>>, vector<1x128xf32>
    %74 = vector.broadcast %73 : vector<1x128xf32> to vector<288x128xf32>
    %75 = arith.mulf %70, %74 : vector<288x128xf32>
    %76 = arith.select %72, %70, %75 : vector<288x128xi1>, vector<288x128xf32>
    %77 = arith.truncf %76 : vector<288x128xf32> to vector<288x128xbf16>
    %c0_95 = arith.constant 0 : index
    %c0_96 = arith.constant 0 : index
    %c0_97 = arith.constant 0 : index
    %78 = vector.load %arg5[%c0_95, %c0_96, %c0_97] : memref<1x288x128xbf16, #tpu.memory_space<vmem>>, vector<1x288x128xbf16>
    %79 = vector.shape_cast %78 : vector<1x288x128xbf16> to vector<288x128xbf16>
    %80 = vector.shape_cast %77 : vector<288x128xbf16> to vector<1x288x128xbf16>
    tpu.vector_store %arg5[%c0_95, %c0_96, %c0_97], %80 {strides = array<i32>} : memref<1x288x128xbf16, #tpu.memory_space<vmem>>, vector<1x288x128xbf16>,
    return
  }
  func.func @transform_0(%arg0: i32, %arg1: i32) -> (i32, i32, i32, i32) {
    %c0_i32 = arith.constant 0 : i32
    %c0_i32_0 = arith.constant 0 : i32
    %c0_i32_1 = arith.constant 0 : i32
    %c0_i32_2 = arith.constant 0 : i32
    return %arg0, %c0_i32, %c0_i32_0, %c0_i32_1 : i32, i32, i32, i32
  }
  func.func @transform_1(%arg0: i32, %arg1: i32) -> (i32, i32, i32) {
    %c0_i32 = arith.constant 0 : i32
    %c0_i32_0 = arith.constant 0 : i32
    %c0_i32_1 = arith.constant 0 : i32
    return %c0_i32, %c0_i32_0, %arg1 : i32, i32, i32
  }
  func.func @transform_2(%arg0: i32, %arg1: i32) -> (i32, i32) {
    %c0_i32 = arith.constant 0 : i32
    %c0_i32_0 = arith.constant 0 : i32
    return %c0_i32, %arg1 : i32, i32
  }
  func.func @transform_3(%arg0: i32, %arg1: i32) -> (i32, i32, i32) {
    %c0_i32 = arith.constant 0 : i32
    %c0_i32_0 = arith.constant 0 : i32
    return %arg0, %c0_i32, %arg1 : i32, i32, i32
  }
}

</mosaic_0001>

<bundles_post_ra>
// kernel: tpu_custom_call.1
= control target key start
LH: loop header
LB: loop body
LE: loop exit
PB: predicated region body
PF: predicated region fallthrough
CT: control target
= control target key end

     0   :  { %8 = vsyncpa [#allocation4], 0  ;;  %s8028_s0 = inlined_call_operand.vmem [shape: bf16[2,1,342,4], index: 0, kind: input, shape index: {}]   ;;  %s8029_s1 = inlined_call_operand.vmem [shape: bf16[9,4,128], index: 1, kind: input, shape index: {}]   ;;  %s8030_s2 = inlined_call_operand.vmem [shape: f32[1,128], index: 2, kind: input, shape index: {}]   ;;  %s8031_s3 = inlined_call_operand.hbm [shape: bf16[2,288,128], index: 3, kind: output, shape index: {}]  }
   0x1   :  { %10 = vsyncpa [#allocation4 + $0x1], 0  ;;  %s7208_s12 = smov 0   ;;  %s7210_s13 = smov 0  }
   0x2   :  { %s7212_s14 = smov 0   ;;  %s7214_s15 = smov 0  }
   0x3   :  { %s7216_s16 = smov 0   ;;  %s7218_s17 = smov 0  }
   0x4 LB: > { %s5530_s18 = sadd.s32 4294967295, %s7183_s17   ;;  %s5531_s19 = sadd.s32 4294967294, %s7183_s17   ;;  %s7183_s17 = sphi %s7218_s17, %s16_s17   ;;  %s7179_s16 = sphi %s7216_s16, %s8038_s16   ;;  %s7175_s15 = sphi %s7214_s15, %s8037_s15   ;;  %s7171_s14 = sphi %s7212_s14, %s8036_s14   ;;  %s7167_s13 = sphi %s7210_s13, %s8035_s13   ;;  %s7163_s12 = sphi %s7208_s12, %s8034_s12  }
   0x5   : > { %s28_s20 = sadd.s32 1, %s7179_s16  ;;  %s115_s21 = sadd.s32 1, %s7171_s14 }
   0x6   : > { %p30_p0 = scmp.ge.s32.totalorder %s28_s20, 2  ;;  %p125_p1 = scmp.ne.s32.totalorder %s7171_s14, %s7167_s13 }
   0x7   : > { %p126_p2 = scmp.eq.s32.totalorder %s5530_s18, 1  ;;  %p131_p3 = scmp.ne.s32.totalorder %s7167_s13, %s7163_s12 }
   0x8   : > { %s8040_s20 = smov (%p30_p0, %s28_s20), 0  ;;  %p132_p5 = scmp.eq.s32.totalorder %s5531_s19, 1 }
   0x9   : > { %p7248_p4 = por %p126_p2, %p125_p1  ;;  %s110_s23 = ssub.s32 %s7179_s16, %s8040_s20 }
   0xa   : > { %p5536_p6 = scmp.ge.s32.totalorder %s7183_s17, 1  ;;  %p113_p7 = scmp.eq.s32.totalorder %s110_s23, 0 }
   0xb   : > { %p7255_p8 = por %p132_p5, %p131_p3  ;;  %p171_p9 = scmp.lt.s32.totalorder %s7183_s17, 3 }
   0xc   : > { %s7261_s25 = scalar_select %p113_p7, %s7171_s14, %s115_s21  }
   0xd   : > { %p172_p10 = pnand %p5536_p6, %p171_p9 }
   0xe   : > { %v251_v0 = vld [vmem:[%s8029_s1] sm:$0x3] (!%p172_p10)  ;;  %vm397_vm0 = vcmask (!%p172_p10), 1041408   ;;  %p202_p11 = scmp.lt.s32.totalorder (!%p172_p10), %s7175_s15, 1  ;;  %v5688_v2 = vld [vmem:[%s8029_s1 + $0x8] sm:$0x3] (!%p172_p10) }
   0xf   : > { %175 = sbr.rel (%p172_p10) target bundleno = 594 (0x252), region = 32  ;;  %6864 = vmatprep.subr.msk.bf16.mxu1 (!%p172_p10), %vm397_vm0, %v251_v0  ;;  %v399_v1 = vsel (!%p172_p10), %vm397_vm0, %v251_v0, 0  ;;  %6868 = vmatprep.subr.msk.bf16.mxu0 (!%p172_p10), %vm397_vm0, %v5688_v2  ;;  %v7275_v3 = vsel (!%p172_p10), %vm397_vm0, %v5688_v2, 0  ;;  %v5726_v4 = vld [vmem:[%s8029_s1 + $0xa] sm:$0x3] (!%p172_p10)  ;;  %vm342_vm1 = vcmask (!%p172_p10), 31744  }
  0x10   : > { %6233 = vmatpush3.bf16.msra.mxu1 (!%p172_p10), %v399_v1  ;;  %v5574_v5 = vld [vmem:[%s8029_s1 + $0x2] sm:$0x3] (!%p172_p10)  ;;  %6385 = vmatpush3.bf16.msra.mxu0 (!%p172_p10), %v7275_v3  ;;  %vm2392_vm2 = vsmask.f32 (!%p172_p10), 6400  ;;  %v7295_v7 = vld [vmem:[%s8029_s1 + $0x4] sm:$0x3] (!%p172_p10) }
  0x11   : > { %6865 = vmatprep.subr.msk.bf16.mxu1 (!%p172_p10), %vm397_vm0, %v5574_v5  ;;  %6870 = vmatprep.subr.msk.bf16.mxu0 (!%p172_p10), %vm397_vm0, %v5726_v4  ;;  %v950_v9 = vsel (!%p172_p10), %vm397_vm0, %v5574_v5, 0  ;;  %v3130_v18 = vsel (!%p172_p10), %vm397_vm0, %v5726_v4, 0  ;;  %v7320_v40 = vld [vmem:[%s8029_s1 + $0xc] sm:$0x3] (!%p172_p10)  ;;  %vm3037_vm3 = vcmask (!%p172_p10), 1045504   ;;  %vm1369_vm5 = vcmask (!%p172_p10), 1046528  }
  0x12   : > { %vm746_vm4 = vsmask.f32 (!%p172_p10), 7424  ;;  %vm4060_vm6 = vsmask.f32 (!%p172_p10), 5376  ;;  %vm4705_vm7 = vcmask (!%p172_p10), 1044480   ;;  %s199_s9 = sand.u32 (!%p172_p10), 1, %s7167_s13  }
  0x13   : > { %s6874_s10 = smul.u32 (!%p172_p10), 144, %s199_s9  ;;  %s7982_s26 = scalar_lea.sflag (!%p172_p10), [#allocation4], %s199_s9 }
  0x14   : > { %s6876_s18 = smul.u32 (!%p172_p10), 2304, %s7175_s15  ;;  %s7185_s28 = smov (!%p172_p10), [#allocation3]  }
  0x15   : > { %s7109_s29 = sshll.u32 (!%p172_p10), %s7185_s28, 4  ;;  %s7110_s29 = int_to_ptr.vmem [resolvable:$false] %s7109_s29 }
  0x16   : > { %s203_s30 = scalar_select %p202_p11, %s7175_s15, 1 }
  0x17   : > { %s7974_s15 = scalar_lea.hbm %s8031_s3, %s6876_s18 }
  0x18   : > { %s6875_s8 = smul.u32 172, %s203_s30  ;;  %s7111_s30 = scalar_lea.vmem %s7110_s29, 4608 }
  0x1a   : > { %s7289_s11 = scalar_lea.vmem %s8028_s0, %s6875_s8 }
  0x1b   : > { %v6934_v6 = vld [vmem:[%s7289_s11] sm:$0xff]   ;;  %v6935_v8 = vld [vmem:[%s7289_s11 + $0x8] sm:$0xff]   ;;  %v6937_v11 = vld [vmem:[%s7289_s11 + $0x10] sm:$0xff]  }
  0x1c   : > { %6234 = vmatprep.mubr.msk.bf16.mxu1 %vm342_vm1, %v6934_v6  ;;  %v6936_v10 = vld [vmem:[%s7289_s11 + $0x8] sm:$0xfe]   ;;  %v6938_v12 = vld [vmem:[%s7289_s11 + $0x10] sm:$0xff]   ;;  %v2402_v15 = vshrl.u32 %v6937_v11, 16  ;;  %v2405_v16 = vshll.u32 %v6937_v11, 16  ;;  %v6939_v17 = vld [vmem:[%s7289_s11 + $0x18] sm:$0xff]  }
  0x1d   : > { %6235 = vmatmul.mubr.msk.bf16.vlgmr.msra.gmra.mrb[0].mxu1 %vm342_vm1, %v6935_v8  ;;  %v2394_v13 = vshrl.u32 %v6936_v10, 16  ;;  %v2397_v14 = vshll.u32 %v6936_v10, 16  ;;  %v2411_v23 = vshrl.u32 %v6939_v17, 16  ;;  %v2414_v24 = vshll.u32 %v6939_v17, 16  ;;  %v6940_v25 = vld [vmem:[%s7289_s11 + $0x18] sm:$0xff]   ;;  %v6941_v26 = vld [vmem:[%s7289_s11 + $0x20] sm:$0xff]  }
  0x1e   : > { %6271 = vmatpush3.bf16.msra.mxu1 %v950_v9  ;;  %6238 = vmatprep.mubr.msk.bf16.mxu1 %vm342_vm1, %v6938_v12  ;;  %v2404_v21 = vrot.slane %v2402_v15, 1  ;;  %v2407_v22 = vrot.slane %v2405_v16, 2  ;;  %v2420_v31 = vshrl.u32 %v6941_v26, 16  ;;  %v2423_v32 = vshll.u32 %v6941_v26, 16  ;;  %v6942_v33 = vld [vmem:[%s7289_s11 + $0x20] sm:$0xff]   ;;  %v6943_v34 = vld [vmem:[%s7289_s11 + $0x28] sm:$0xff]  }
  0x1f   : > { %6866 = vmatprep.subr.msk.bf16.mxu1 %vm397_vm0, %v7295_v7  ;;  %v2396_v19 = vrot.slane %v2394_v13, 1  ;;  %v2399_v20 = vrot.slane %v2397_v14, 2  ;;  %v2413_v29 = vrot.slane %v2411_v23, 1  ;;  %v2416_v30 = vrot.slane %v2414_v24, 2  ;;  %v6944_v42 = vld [vmem:[%s7289_s11 + $0x28] sm:$0xff]   ;;  %v6945_v43 = vld [vmem:[%s7289_s11 + $0x30] sm:$0xff]  }
  0x20   : > { %v2408_v28 = vor.u32 %v2407_v22, %v2404_v21  ;;  %v2422_v37 = vrot.slane %v2420_v31, 1  ;;  %v2425_v38 = vrot.slane %v2423_v32, 2  ;;  %v2429_v39 = vshrl.u32 %v6943_v34, 16  ;;  %v6946_v47 = vld [vmem:[%s7289_s11 + $0x30] sm:$0xff]   ;;  %v6947_v51 = vld [vmem:[%s7289_s11 + $0x38] sm:$0xff]   ;;  %v6949_v58 = vld [vmem:[%s7289_s11 + $0x40] sm:$0xff]  }
  0x21   : > { %v2400_v27 = vor.u32 %v2399_v20, %v2396_v19  ;;  %v2417_v36 = vor.u32 %v2416_v30, %v2413_v29  ;;  %v2432_v41 = vshll.u32 %v6943_v34, 16  ;;  %v2438_v49 = vshrl.u32 %v6945_v43, 16  ;;  %v6951_v1 = vld [vmem:[%s7289_s11 + $0x48] sm:$0xff]   ;;  %v6948_v4 = vld [vmem:[%s7289_s11 + $0x38] sm:$0xff]   ;;  %v6953_v8 = vld [vmem:[%s7289_s11 + $0x50] sm:$0xff]  }
  0x22   : > { %v2426_v45 = vor.u32 %v2425_v38, %v2422_v37  ;;  %v2431_v46 = vrot.slane %v2429_v39, 1  ;;  %v2441_v50 = vshll.u32 %v6945_v43, 16  ;;  %v2447_v56 = vshrl.u32 %v6947_v51, 16  ;;  %v6950_v12 = vld [vmem:[%s7289_s11 + $0x40] sm:$0xff]   ;;  %v6952_v23 = vld [vmem:[%s7289_s11 + $0x48] sm:$0xff]   ;;  %v6954_v24 = vld [vmem:[%s7289_s11 + $0x50] sm:$0xff]  }
  0x23   : > { %v2409_v35 = vsel %vm2392_vm2, %v2400_v27, %v2408_v28  ;;  %v2418_v44 = vsel %vm2392_vm2, %v2408_v28, %v2417_v36  ;;  %v2434_v48 = vrot.slane %v2432_v41, 2  ;;  %v2440_v54 = vrot.slane %v2438_v49, 1  ;;  %v6958_v29 = vld [vmem:[%s7289_s11 + $0x10] sm:$0xff]   ;;  %v6957_v34 = vld [vmem:[%s7289_s11 + $0x8] sm:$0xfc]   ;;  %v6959_v37 = vld [vmem:[%s7289_s11 + $0x60] sm:$0xff]  }
  0x24   : > { %6386 = vmatprep.mubr.msk.bf16.mxu0 %vm342_vm1, %v2409_v35  ;;  %v2427_v52 = vsel %vm2392_vm2, %v2417_v36, %v2426_v45  ;;  %v2443_v55 = vrot.slane %v2441_v50, 2  ;;  %v2450_v57 = vshll.u32 %v6947_v51, 16  ;;  %v2449_v60 = vrot.slane %v2447_v56, 1  ;;  %v6956_v35 = vld [vmem:[%s7289_s11 + $0x58] sm:$0xff]   ;;  %v6971_v49 = vld [vmem:[%s7289_s11] sm:$0xff]   ;;  %v6964_v50 = vld [vmem:[%s7289_s11 + $0x28] sm:$0xff]  }
  0x25   : > { %6239 = vmatmul.mubr.msk.bf16.gmra.mrb[4].mxu1 %vm342_vm1, %v6940_v25  ;;  %6387 = vmatmul.mubr.msk.bf16.vlgmr.msra.gmra.mrb[0].mxu0 %vm342_vm1, %v2418_v44  ;;  %v2435_v53 = vor.u32 %v2434_v48, %v2431_v46  ;;  %v2456_v63 = vshrl.u32 %v6949_v58, 16  ;;  %v2459_v0 = vshll.u32 %v6949_v58, 16  ;;  %v2465_v9 = vshrl.u32 %v6951_v1, 16  ;;  %v6962_v44 = vld [vmem:[%s7289_s11 + $0x20] sm:$0xff]  }
  0x26   : > { %6242 = vmatprep.mubr.msk.bf16.mxu1 %vm342_vm1, %v6942_v33  ;;  %6423 = vmatpush3.bf16.msra.mxu0 %v3130_v18  ;;  %v2444_v59 = vor.u32 %v2443_v55, %v2440_v54  ;;  %v2452_v62 = vrot.slane %v2450_v57, 2  ;;  %v2468_v10 = vshll.u32 %v6951_v1, 16  ;;  %v2474_v14 = vshrl.u32 %v6953_v8, 16  ;;  %v6955_v18 = vld [vmem:[%s7289_s11 + $0x58] sm:$0xff]   ;;  %v6966_v55 = vld [vmem:[%s7289_s11 + $0x30] sm:$0xff]  }
  0x27   : > { %6390 = vmatprep.mubr.msk.bf16.mxu0 %vm342_vm1, %v2427_v52  ;;  %6871 = vmatprep.subr.msk.bf16.mxu0 %vm397_vm0, %v7320_v40  ;;  %v2436_v61 = vsel %vm2392_vm2, %v2426_v45, %v2435_v53  ;;  %v2458_v5 = vrot.slane %v2456_v63, 1  ;;  %v2461_v6 = vrot.slane %v2459_v0, 2  ;;  %v2477_v15 = vshll.u32 %v6953_v8, 16  ;;  %v6961_v45 = vld [vmem:[%s7289_s11 + $0x68] sm:$0xff]   ;;  %v6968_v0 = vld [vmem:[%s7289_s11 + $0x38] sm:$0xff]   ;;  %v6974_v1 = vld [vmem:[%s7289_s11 + $0x10] sm:$0xff]  }
  0x28   : > { %v2445_v2 = vsel %vm2392_vm2, %v2435_v53, %v2444_v59  ;;  %v2453_v11 = vor.u32 %v2452_v62, %v2449_v60  ;;  %v2467_v16 = vrot.slane %v2465_v9, 1  ;;  %v2470_v17 = vrot.slane %v2468_v10, 2  ;;  %v6972_v53 = vld [vmem:[%s7289_s11 + $0x8] sm:$0xff]  }
  0x29   : > { %v2462_v13 = vor.u32 %v2461_v6, %v2458_v5  ;;  %v2476_v21 = vrot.slane %v2474_v14, 1  ;;  %v2479_v22 = vrot.slane %v2477_v15, 2  ;;  %v2483_v26 = vshrl.u32 %v6955_v18, 16  ;;  %v7388_v57 = vld [vmem:[%s8029_s1 + $0xe] sm:$0x3]  ;;  %v6976_v6 = vld [vmem:[%s7289_s11 + $0x18] sm:$0xff]  }
  0x2a   : > { %v2454_v19 = vsel %vm2392_vm2, %v2444_v59, %v2453_v11  ;;  %v2471_v25 = vor.u32 %v2470_v17, %v2467_v16  ;;  %v2486_v27 = vshll.u32 %v6955_v18, 16  ;;  %v3038_v38 = vrot.slane %v6957_v34, 2  ;;  %v6965_v59 = vld [vmem:[%s7289_s11 + $0x78] sm:$0xff]   ;;  %v6969_v10 = vld [vmem:[%s7289_s11 + $0x88] sm:$0xff]  }
  0x2b   : > { %v2463_v20 = vsel %vm2392_vm2, %v2453_v11, %v2462_v13  ;;  %v2480_v28 = vor.u32 %v2479_v22, %v2476_v21  ;;  %v2485_v31 = vrot.slane %v2483_v26, 1  ;;  %v3039_v39 = vrot.slane %v6958_v29, 2  ;;  %v6973_v18 = vld [vmem:[%s7289_s11 + $0x48] sm:$0xff]  }
  0x2c   : > { %v2472_v30 = vsel %vm2392_vm2, %v2462_v13, %v2471_v25  ;;  %v2488_v32 = vrot.slane %v2486_v27, 2  ;;  %v3043_v48 = vrot.slane %v6962_v44, 2  ;;  %v3641_v52 = vsel %vm397_vm0, %v7320_v40, 0  ;;  %v6967_v40 = vld [vmem:[%s7289_s11 + $0x80] sm:$0xff]   ;;  %v6980_v27 = vld [vmem:[%s7289_s11 + $0x28] sm:$0xff]   ;;  %v6984_v44 = vld [vmem:[%s7289_s11 + $0x38] sm:$0xff]  }
  0x2d   : > { %6243 = vmatmul.mubr.msk.bf16.gmra.mrb[8].mxu1 %vm342_vm1, %v6944_v42  ;;  %6391 = vmatmul.mubr.msk.bf16.gmra.mrb[4].mxu0 %vm342_vm1, %v2436_v61  ;;  %v2481_v33 = vsel %vm2392_vm2, %v2471_v25, %v2480_v28  ;;  %v6960_v42 = vld [vmem:[%s7289_s11 + $0x18] sm:$0xff]   ;;  %v3040_v43 = vsel %vm3037_vm3, %v3038_v38, %v3039_v39  ;;  %v750_v56 = vshll.u32 %v6971_v49, 16  ;;  %v3045_v58 = vrot.slane %v6964_v50, 2 }
  0x2e   : > { %6246 = vmatprep.mubr.msk.bf16.mxu1 %vm342_vm1, %v6946_v47  ;;  %6394 = vmatprep.mubr.msk.bf16.mxu0 %vm342_vm1, %v2445_v2  ;;  %v7361_v36 = vor.u32 %v2488_v32, %v2485_v31  ;;  %v3041_v46 = vrot.slane %v6960_v42, 2  ;;  %v6963_v47 = vld [vmem:[%s7289_s11 + $0x70] sm:$0xff]   ;;  %v755_v60 = vshll.u32 %v6972_v53, 16  ;;  %v3047_v61 = vrot.slane %v6966_v55, 2  ;;  %v6977_v38 = vld [vmem:[%s7289_s11 + $0x58] sm:$0xff]  }
  0x2f   : > { %v748_v62 = vshrl.u32 %v6971_v49, 16  ;;  %v752_v63 = vrot.slane %v750_v56, 1  ;;  %v3046_v2 = vsel %vm3037_vm3, %v3043_v48, %v3045_v58  ;;  %v763_v11 = vshll.u32 %v6974_v1, 16  ;;  %v6981_v56 = vld [vmem:[%s7289_s11 + $0x68] sm:$0xff]  }
  0x30   : > { %v2490_v41 = vsel %vm2392_vm2, %v2480_v28, %v7361_v36  ;;  %v3042_v51 = vsel %vm3037_vm3, %v3039_v39, %v3041_v46  ;;  %v3044_v54 = vsel %vm3037_vm3, %v3041_v46, %v3043_v48  ;;  %v757_v5 = vrot.slane %v755_v60, 1 }
  0x31   : > { %v3048_v8 = vsel %vm3037_vm3, %v3045_v58, %v3047_v61  ;;  %v753_v9 = vor.u32 %v752_v63, %v748_v62  ;;  %v759_v13 = vshrl.u32 %v6972_v53, 16  ;;  %v767_v16 = vshrl.u32 %v6974_v1, 16  ;;  %v6988_v1 = vld [vmem:[%s7289_s11 + $0x48] sm:$0xff]  }
  0x32   : > { %v771_v17 = vshll.u32 %v6976_v6, 16  ;;  %v1462_v28 = vsel %vm397_vm0, %v7295_v7, 0  ;;  %v3053_v29 = vrot.slane %v6973_v18, 2  ;;  %v6979_v7 = vld [vmem:[%s7289_s11 + $0x60] sm:$0xff]   ;;  %v3057_v48 = vrot.slane %v6977_v38, 2 }
  0x33   : > { %v758_v15 = vsel %vm746_vm4, %v753_v9, %v757_v5  ;;  %v761_v22 = vor.u32 %v759_v13, %v757_v5  ;;  %v3059_v49 = vrot.slane %v6979_v7, 2 }
  0x34   : > { %v773_v26 = vrot.slane %v771_v17, 1  ;;  %v6987_v17 = vld [vmem:[%s7289_s11 + $0x80] sm:$0xff]  }
  0x35   : > { %6247 = vmatmul.mubr.msk.bf16.gmra.mrb[12].mxu1 %vm342_vm1, %v6948_v4  ;;  %6395 = vmatmul.mubr.msk.bf16.gmra.mrb[8].mxu0 %vm342_vm1, %v2454_v19  ;;  %v6970_v4 = vld [vmem:[%s7289_s11 + $0x40] sm:$0xff]   ;;  %v765_v19 = vrot.slane %v763_v11, 1  ;;  %v3060_v62 = vsel %vm3037_vm3, %v3057_v48, %v3059_v49  ;;  %v819_v11 = vshll.u32 %v6988_v1, 16 }
  0x36   : > { %6250 = vmatprep.mubr.msk.bf16.mxu1 %vm342_vm1, %v6950_v12  ;;  %6398 = vmatprep.mubr.msk.bf16.mxu0 %vm342_vm1, %v2463_v20  ;;  %v3049_v12 = vrot.slane %v6968_v0, 2  ;;  %v3051_v14 = vrot.slane %v6970_v4, 2  ;;  %v6978_v20 = vld [vmem:[%s7289_s11 + $0x20] sm:$0xff]  }
  0x37   : > { %v769_v25 = vor.u32 %v767_v16, %v765_v19  ;;  %v766_v31 = vsel %vm746_vm4, %v761_v22, %v765_v19  ;;  %v7457_v22 = vld [vmem:[%s8029_s1 + $0x6] sm:$0x3] }
  0x38   : > { %v3050_v21 = vsel %vm3037_vm3, %v3047_v61, %v3049_v12  ;;  %v3054_v42 = vsel %vm3037_vm3, %v3051_v14, %v3053_v29  ;;  %v6983_v61 = vld [vmem:[%s7289_s11 + $0x70] sm:$0xff]  }
  0x39   : > { %v774_v34 = vsel %vm746_vm4, %v769_v25, %v773_v26 }
  0x3d   : > { %6251 = vmatmul.mubr.msk.bf16.gmra.mrb[16].mxu1 %vm342_vm1, %v6952_v23  ;;  %6399 = vmatmul.mubr.msk.bf16.gmra.mrb[12].mxu0 %vm342_vm1, %v2472_v30  ;;  %v6975_v23 = vld [vmem:[%s7289_s11 + $0x50] sm:$0xff]   ;;  %v779_v30 = vshll.u32 %v6978_v20, 16 }
  0x3e   : > { %6254 = vmatprep.mubr.msk.bf16.mxu1 %vm342_vm1, %v6954_v24  ;;  %6402 = vmatprep.mubr.msk.bf16.mxu0 %vm342_vm1, %v2481_v33  ;;  %v3052_v24 = vsel %vm3037_vm3, %v3049_v12, %v3051_v14  ;;  %v3055_v32 = vrot.slane %v6975_v23, 2  ;;  %v775_v33 = vshrl.u32 %v6976_v6, 16  ;;  %v3063_v6 = vrot.slane %v6983_v61, 2  ;;  %v6985_v12 = vld [vmem:[%s7289_s11 + $0x78] sm:$0xff]   ;;  %v6990_v14 = vld [vmem:[%s7289_s11 + $0x50] sm:$0xff]  }
  0x3f   : > { %v781_v39 = vrot.slane %v779_v30, 1  ;;  %v827_v23 = vshll.u32 %v6990_v14, 16 }
  0x45   : > { %6255 = vmatmul.mubr.msk.bf16.gmra.mrb[20].mxu1 %vm342_vm1, %v6956_v35  ;;  %6403 = vmatmul.mubr.msk.bf16.gmra.mrb[16].mxu0 %vm342_vm1, %v2490_v41  ;;  %v783_v35 = vshrl.u32 %v6978_v20, 16  ;;  %v6982_v41 = vld [vmem:[%s7289_s11 + $0x30] sm:$0xff]   ;;  %v821_v20 = vrot.slane %v819_v11, 1  ;;  %v6998_v11 = vld [vmem:[%s7289_s11 + $0x20] sm:$0xff]  }
  0x46   : > { %6258 = vmatprep.mubr.msk.bf16.mxu1 %vm342_vm1, %v6959_v37  ;;  %6424 = vmatprep.mubr.msk.bf16.mxu0 %vm342_vm1, %v3040_v43  ;;  %v787_v37 = vshll.u32 %v6980_v27, 16  ;;  %v777_v43 = vor.u32 %v775_v33, %v773_v26  ;;  %v795_v50 = vshll.u32 %v6982_v41, 16  ;;  %v799_v53 = vshrl.u32 %v6982_v41, 16  ;;  %v6994_v33 = vld [vmem:[%s7289_s11 + $0x60] sm:$0xff]   ;;  %v6997_v41 = vld [vmem:[%s7289_s11 + $0x68] sm:$0xff]  }
  0x47   : > { %v785_v46 = vor.u32 %v783_v35, %v781_v39  ;;  %v3067_v26 = vrot.slane %v6987_v17, 2  ;;  %v7005_v17 = vld [vmem:[%s7289_s11 + $0x88] sm:$0xff]  }
  0x48   : > { %v797_v58 = vrot.slane %v795_v50, 1  ;;  %v851_v50 = vshll.u32 %v6997_v41, 16 }
  0x4a   : > { %v801_v63 = vor.u32 %v799_v53, %v797_v58 }
  0x4d   : > { %6259 = vmatmul.mubr.msk.bf16.gmra.mrb[24].mxu1 %vm342_vm1, %v6961_v45  ;;  %6425 = vmatmul.mubr.msk.bf16.vlgmr.msra.gmra.mrb[0].mxu0 %vm342_vm1, %v3042_v51  ;;  %v3056_v45 = vsel %vm3037_vm3, %v3053_v29, %v3055_v32  ;;  %v782_v51 = vsel %vm746_vm4, %v777_v43, %v781_v39  ;;  %v831_v29 = vshrl.u32 %v6990_v14, 16  ;;  %v843_v43 = vshll.u32 %v6994_v33, 16 }
  0x4e   : > { %6262 = vmatprep.mubr.msk.bf16.mxu1 %vm342_vm1, %v6963_v47  ;;  %6461 = vmatpush3.bf16.msra.mxu0 %v3641_v52  ;;  %v789_v47 = vrot.slane %v787_v37, 1  ;;  %v791_v52 = vshrl.u32 %v6980_v27, 16  ;;  %v823_v27 = vshrl.u32 %v6988_v1, 16  ;;  %v6991_v37 = vld [vmem:[%s7289_s11 + $0x90] sm:$0xff]   ;;  %v855_v1 = vshrl.u32 %v6997_v41, 16 }
  0x4f   : > { %6428 = vmatprep.mubr.msk.bf16.mxu0 %vm342_vm1, %v3044_v54  ;;  %6872 = vmatprep.subr.msk.bf16.mxu0 %vm397_vm0, %v7388_v57  ;;  %v803_v54 = vshll.u32 %v6984_v44, 16 }
  0x50   : > { %v790_v55 = vsel %vm746_vm4, %v785_v46, %v789_v47  ;;  %v793_v60 = vor.u32 %v791_v52, %v789_v47  ;;  %v825_v35 = vor.u32 %v823_v27, %v821_v20  ;;  %v6999_v52 = vld [vmem:[%s7289_s11 + $0x70] sm:$0xff]  }
  0x51   : > { %v805_v0 = vrot.slane %v803_v54, 1  ;;  %v7002_v27 = vld [vmem:[%s7289_s11 + $0x30] sm:$0xff]  }
  0x52   : > { %v798_v5 = vsel %vm746_vm4, %v793_v60, %v797_v58  ;;  %v6995_v58 = vld [vmem:[%s7289_s11 + $0x10] sm:$0xfc]   ;;  %v7001_v60 = vld [vmem:[%s7289_s11 + $0x78] sm:$0xff]  }
  0x53   : > { %v806_v9 = vsel %vm746_vm4, %v801_v63, %v805_v0 }
  0x55   : > { %6263 = vmatmul.mubr.msk.bf16.gmra.mrb[28].mxu1 %vm342_vm1, %v6965_v59  ;;  %6429 = vmatmul.mubr.msk.bf16.gmra.mrb[4].mxu0 %vm342_vm1, %v3046_v2  ;;  %v6986_v59 = vld [vmem:[%s7289_s11 + $0x40] sm:$0xff]   ;;  %v3061_v2 = vrot.slane %v6981_v56, 2 }
  0x56   : > { %6266 = vmatprep.mubr.msk.bf16.mxu1 %vm342_vm1, %v6967_v40  ;;  %6432 = vmatprep.mubr.msk.bf16.mxu0 %vm342_vm1, %v3048_v8  ;;  %v3058_v40 = vsel %vm3037_vm3, %v3055_v32, %v3057_v48  ;;  %v811_v4 = vshll.u32 %v6986_v59, 16  ;;  %v807_v8 = vshrl.u32 %v6984_v44, 16  ;;  %v829_v32 = vrot.slane %v827_v23, 1  ;;  %v6993_v48 = vld [vmem:[%s7289_s11 + $0x98] ss:$0 sps:$4 sm:$0x33]  }
  0x57   : > { %v3064_v18 = vsel %vm3037_vm3, %v3061_v2, %v3063_v6  ;;  %v3073_v61 = vrot.slane %v6993_v48, 2  ;;  %v871_v23 = vshrl.u32 %v7001_v60, 16 }
  0x58   : > { %v813_v13 = vrot.slane %v811_v4, 1  ;;  %v809_v16 = vor.u32 %v807_v8, %v805_v0  ;;  %v833_v39 = vor.u32 %v831_v29, %v829_v32  ;;  %v830_v44 = vsel %vm746_vm4, %v825_v35, %v829_v32  ;;  %v7003_v8 = vld [vmem:[%s7289_s11 + $0x80] sm:$0xff]   ;;  %v7007_v29 = vld [vmem:[%s7289_s11 + $0x90] ss:$0 sps:$4 sm:$0x11]   ;;  %v7004_v32 = vld [vmem:[%s7289_s11 + $0x38] sm:$0xff]  }
  0x59   : > { %v3558_v41 = vrot.slane %v7004_v32, 2  ;;  %v7024_v32 = vld [vmem:[%s7289_s11 + $0x40] sm:$0xff]  }
  0x5a   : > { %v814_v25 = vsel %vm746_vm4, %v809_v16, %v813_v13 }
  0x5d   : > { %6267 = vmatmul.mubr.msk.bf16.gmra.mrb[32].mxu1 %vm342_vm1, %v6969_v10  ;;  %6433 = vmatmul.mubr.msk.bf16.gmra.mrb[8].mxu0 %vm342_vm1, %v3050_v21  ;;  %v815_v10 = vshrl.u32 %v6986_v59, 16  ;;  %v6992_v21 = vld [vmem:[%s7289_s11 + $0x58] sm:$0xff]  }
  0x5e   : > { %6272 = vmatprep.mubr.msk.bf16.mxu1 %vm342_vm1, %v758_v15  ;;  %6436 = vmatprep.mubr.msk.bf16.mxu0 %vm342_vm1, %v3052_v24  ;;  %v3062_v15 = vsel %vm3037_vm3, %v3059_v49, %v3061_v2  ;;  %v3065_v24 = vrot.slane %v6985_v12, 2  ;;  %v835_v30 = vshll.u32 %v6992_v21, 16  ;;  %v839_v46 = vshrl.u32 %v6992_v21, 16 }
  0x5f   : > { %v817_v19 = vor.u32 %v815_v10, %v813_v13  ;;  %v847_v49 = vshrl.u32 %v6994_v33, 16  ;;  %v3549_v2 = vrot.slane %v6995_v58, 2  ;;  %v7000_v13 = vld [vmem:[%s7289_s11 + $0x28] sm:$0xff]   ;;  %v4286_v33 = vsel %vm397_vm0, %v7388_v57, 0 }
  0x60   : > { %v3068_v38 = vsel %vm3037_vm3, %v3065_v24, %v3067_v26  ;;  %v837_v7 = vrot.slane %v835_v30, 1  ;;  %v3554_v21 = vrot.slane %v7000_v13, 2 }
  0x62   : > { %v838_v47 = vsel %vm746_vm4, %v833_v39, %v837_v7  ;;  %v841_v54 = vor.u32 %v839_v46, %v837_v7  ;;  %v891_v39 = vshll.u32 %v7007_v29, 16  ;;  %v3556_v7 = vrot.slane %v7002_v27, 2  ;;  %v7006_v46 = vld [vmem:[%s7289_s11 + $0x40] sm:$0xff]  }
  0x64   : > { %v3557_v48 = vsel %vm3037_vm3, %v3554_v21, %v3556_v7 }
  0x65   : > { %6273 = vmatmul.mubr.msk.bf16.vlgmr.msra.gmra.mrb[0].mxu1 %vm342_vm1, %v766_v31  ;;  %6437 = vmatmul.mubr.msk.bf16.gmra.mrb[12].mxu0 %vm342_vm1, %v3054_v42  ;;  %v6989_v31 = vld [vmem:[%s7289_s11 + $0x88] sm:$0xff]  }
  0x66   : > { %6276 = vmatprep.mubr.msk.bf16.mxu1 %vm342_vm1, %v774_v34  ;;  %6309 = vmatpush3.bf16.msra.mxu1 %v1462_v28  ;;  %v822_v28 = vsel %vm746_vm4, %v817_v19, %v821_v20  ;;  %v3066_v34 = vsel %vm3037_vm3, %v3063_v6, %v3065_v24  ;;  %v3069_v42 = vrot.slane %v6989_v31, 2  ;;  %v867_v6 = vshll.u32 %v7001_v60, 16  ;;  %v7011_v60 = vld [vmem:[%s7289_s11 + $0x50] sm:$0xff]  }
  0x67   : > { %6440 = vmatprep.mubr.msk.bf16.mxu0 %vm342_vm1, %v3056_v45  ;;  %6867 = vmatprep.subr.msk.bf16.mxu1 %vm397_vm0, %v7457_v22  ;;  %v3071_v45 = vrot.slane %v6991_v37, 2  ;;  %v3552_v19 = vrot.slane %v6998_v11, 2 }
  0x68   : > { %v3070_v53 = vsel %vm3037_vm3, %v3067_v26, %v3069_v42  ;;  %v869_v16 = vrot.slane %v867_v6, 1  ;;  %v883_v26 = vshll.u32 %v7005_v17, 16  ;;  %v7016_v6 = vld [vmem:[%s7289_s11 + $0x20] sm:$0xff]  }
  0x69   : > { %v3072_v56 = vsel %vm3037_vm3, %v3069_v42, %v3071_v45  ;;  %v3074_v10 = vsel %vm3037_vm3, %v3071_v45, %v3073_v61  ;;  %v887_v42 = vshrl.u32 %v7005_v17, 16  ;;  %v7009_v45 = vld [vmem:[%s7289_s11] sm:$0xfe]   ;;  %v1377_v13 = vrot.slane %v7016_v6, 1 }
  0x6a   : > { %v873_v31 = vor.u32 %v871_v23, %v869_v16  ;;  %v885_v37 = vrot.slane %v883_v26, 1  ;;  %v7022_v23 = vld [vmem:[%s7289_s11 + $0x38] sm:$0xff]   ;;  %v7036_v6 = vld [vmem:[%s7289_s11 + $0x20] sm:$0xff]  }
  0x6b   : > { %v1383_v29 = vrot.slane %v7022_v23, 1 }
  0x6d   : > { %6277 = vmatmul.mubr.msk.bf16.gmra.mrb[4].mxu1 %vm342_vm1, %v782_v51  ;;  %6441 = vmatmul.mubr.msk.bf16.gmra.mrb[16].mxu0 %vm342_vm1, %v3058_v40  ;;  %v845_v51 = vrot.slane %v843_v43, 1  ;;  %v853_v40 = vrot.slane %v851_v50, 1  ;;  %v7010_v43 = vld [vmem:[%s7289_s11 + $0x8] sm:$0xff]   ;;  %v3559_v50 = vsel %vm3037_vm3, %v3556_v7, %v3558_v41  ;;  %v1385_v7 = vrot.slane %v7024_v32, 1 }
  0x6e   : > { %6280 = vmatprep.mubr.msk.bf16.mxu1 %vm342_vm1, %v790_v55  ;;  %6444 = vmatprep.mubr.msk.bf16.mxu0 %vm342_vm1, %v3060_v62  ;;  %v6996_v55 = vld [vmem:[%s7289_s11 + $0x18] sm:$0xff]   ;;  %v859_v62 = vshll.u32 %v6999_v52, 16 }
  0x6f   : > { %v849_v59 = vor.u32 %v847_v49, %v845_v51  ;;  %v846_v63 = vsel %vm746_vm4, %v841_v54, %v845_v51  ;;  %v3550_v0 = vrot.slane %v6996_v55, 2  ;;  %v857_v12 = vor.u32 %v855_v1, %v853_v40  ;;  %v7008_v51 = vld [vmem:[%s7289_s11 + $0x48] sm:$0xff]  }
  0x70   : > { %v889_v49 = vor.u32 %v887_v42, %v885_v37  ;;  %v3560_v54 = vrot.slane %v7006_v46, 2  ;;  %v3562_v58 = vrot.slane %v7008_v51, 2 }
  0x71   : > { %v854_v4 = vsel %vm746_vm4, %v849_v59, %v853_v40  ;;  %v3551_v14 = vsel %vm3037_vm3, %v3549_v2, %v3550_v0  ;;  %v3553_v30 = vsel %vm3037_vm3, %v3550_v0, %v3552_v19  ;;  %v7014_v40 = vld [vmem:[%s7289_s11 + $0x18] sm:$0xff]   ;;  %v3564_v2 = vrot.slane %v7011_v60, 2 }
  0x72   : > { %v3561_v61 = vsel %vm3037_vm3, %v3558_v41, %v3560_v54  ;;  %v3563_v0 = vsel %vm3037_vm3, %v3560_v54, %v3562_v58  ;;  %v1375_v1 = vrot.slane %v7014_v40, 1  ;;  %v7025_v41 = vld [vmem:[%s7289_s11 + $0x88] sm:$0xff]   ;;  %v7029_v54 = vld [vmem:[%s7289_s11 + $0x98] sm:$0xff]  }
  0x73   : > { %v3565_v11 = vsel %vm3037_vm3, %v3562_v58, %v3564_v2  ;;  %v3578_v46 = vrot.slane %v7025_v41, 2  ;;  %v7032_v58 = vld [vmem:[%s7289_s11 + $0x60] sm:$0xff]   ;;  %v7035_v40 = vld [vmem:[%s7289_s11 + $0x68] sm:$0xff]  }
  0x75   : > { %6281 = vmatmul.mubr.msk.bf16.gmra.mrb[8].mxu1 %vm342_vm1, %v798_v5  ;;  %6445 = vmatmul.mubr.msk.bf16.gmra.mrb[20].mxu0 %vm342_vm1, %v3062_v15  ;;  %v863_v5 = vshrl.u32 %v6999_v52, 16  ;;  %v1370_v52 = vrot.slane %v7009_v45, 1  ;;  %v7028_v45 = vld [vmem:[%s7289_s11 + $0x50] sm:$0xff]  }
  0x76   : > { %6284 = vmatprep.mubr.msk.bf16.mxu1 %vm342_vm1, %v806_v9  ;;  %6448 = vmatprep.mubr.msk.bf16.mxu0 %vm342_vm1, %v3064_v18  ;;  %v861_v9 = vrot.slane %v859_v62, 1  ;;  %v875_v18 = vshll.u32 %v7003_v8, 16  ;;  %v1389_v51 = vrot.slane %v7028_v45, 1 }
  0x78   : > { %v865_v15 = vor.u32 %v863_v5, %v861_v9  ;;  %v862_v20 = vsel %vm746_vm4, %v857_v12, %v861_v9  ;;  %v7018_v9 = vld [vmem:[%s7289_s11 + $0x28] sm:$0xff]   ;;  %v7015_v12 = vld [vmem:[%s7289_s11 + $0x60] sm:$0xff]  }
  0x79   : > { %v3568_v17 = vrot.slane %v7015_v12, 2  ;;  %v7038_v12 = vld [vmem:[%s7289_s11 + $0x28] sm:$0xff]  }
  0x7a   : > { %v870_v24 = vsel %vm746_vm4, %v865_v15, %v869_v16  ;;  %v7017_v15 = vld [vmem:[%s7289_s11 + $0x68] sm:$0xff]   ;;  %v1379_v16 = vrot.slane %v7018_v9, 1 }
  0x7d   : > { %6285 = vmatmul.mubr.msk.bf16.gmra.mrb[12].mxu1 %vm342_vm1, %v814_v25  ;;  %6449 = vmatmul.mubr.msk.bf16.gmra.mrb[24].mxu0 %vm342_vm1, %v3066_v34  ;;  %v879_v25 = vshrl.u32 %v7003_v8, 16  ;;  %v3555_v34 = vsel %vm3037_vm3, %v3552_v19, %v3554_v21  ;;  %v7020_v19 = vld [vmem:[%s7289_s11 + $0x30] sm:$0xff]   ;;  %v1380_v21 = vsel %vm1369_vm5, %v1377_v13, %v1379_v16 }
  0x7e   : > { %6288 = vmatprep.mubr.msk.bf16.mxu1 %vm342_vm1, %v822_v28  ;;  %6452 = vmatprep.mubr.msk.bf16.mxu0 %vm342_vm1, %v3068_v38  ;;  %v877_v28 = vrot.slane %v875_v18, 1  ;;  %v7514_v38 = vld [vmem:[%s8029_s1 + $0x10] sm:$0x3]  ;;  %v1378_v18 = vsel %vm1369_vm5, %v1375_v1, %v1377_v13  ;;  %v1381_v26 = vrot.slane %v7020_v19, 1  ;;  %v4082_v19 = vshll.u32 %v7036_v6, 16 }
  0x80   : > { %v881_v35 = vor.u32 %v879_v25, %v877_v28  ;;  %v878_v57 = vsel %vm746_vm4, %v873_v31, %v877_v28  ;;  %v7019_v25 = vld [vmem:[%s7289_s11 + $0x70] sm:$0xff]   ;;  %v7021_v28 = vld [vmem:[%s7289_s11 + $0x78] sm:$0xff]   ;;  %v1382_v31 = vsel %vm1369_vm5, %v1379_v16, %v1381_v26 }
  0x85   : > { %6289 = vmatmul.mubr.msk.bf16.gmra.mrb[16].mxu1 %vm342_vm1, %v830_v44  ;;  %6453 = vmatmul.mubr.msk.bf16.gmra.mrb[28].mxu0 %vm342_vm1, %v3070_v53  ;;  %v886_v44 = vsel %vm746_vm4, %v881_v35, %v885_v37  ;;  %v1371_v53 = vrot.slane %v7010_v43, 1  ;;  %v7026_v35 = vld [vmem:[%s7289_s11 + $0x48] sm:$0xff]  }
  0x86   : > { %6292 = vmatprep.mubr.msk.bf16.mxu1 %vm342_vm1, %v838_v47  ;;  %6456 = vmatprep.mubr.msk.bf16.mxu0 %vm342_vm1, %v3072_v56  ;;  %v893_v47 = vrot.slane %v891_v39, 1  ;;  %v7012_v56 = vld [vmem:[%s7289_s11 + $0x10] sm:$0xff]   ;;  %v7023_v39 = vld [vmem:[%s7289_s11 + $0x80] sm:$0xff]   ;;  %v1387_v42 = vrot.slane %v7026_v35, 1 }
  0x87   : > { %v1372_v59 = vsel %vm1369_vm5, %v1370_v52, %v1371_v53  ;;  %v1373_v62 = vrot.slane %v7012_v56, 1  ;;  %v3576_v43 = vrot.slane %v7023_v39, 2  ;;  %v7034_v52 = vld [vmem:[%s7289_s11 + $0x18] sm:$0xff]   ;;  %v7033_v56 = vld [vmem:[%s7289_s11 + $0x10] sm:$0xfc]   ;;  %v7041_v39 = vld [vmem:[%s7289_s11 + $0x80] sm:$0xff]  }
  0x88   : > { %v894_v55 = vsel %vm746_vm4, %v889_v49, %v893_v47  ;;  %v1388_v47 = vsel %vm1369_vm5, %v1385_v7, %v1387_v42  ;;  %v7027_v49 = vld [vmem:[%s7289_s11 + $0x90] sm:$0xff]   ;;  %v1390_v60 = vsel %vm1369_vm5, %v1387_v42, %v1389_v51 }
  0x89   : > { %v1376_v8 = vsel %vm1369_vm5, %v1373_v62, %v1375_v1 }
  0x8d   : > { %6293 = vmatmul.mubr.msk.bf16.gmra.mrb[20].mxu1 %vm342_vm1, %v846_v63  ;;  %6457 = vmatmul.mubr.msk.bf16.gmra.mrb[32].mxu0 %vm342_vm1, %v3074_v10  ;;  %v7013_v63 = vld [vmem:[%s7289_s11 + $0x58] sm:$0xff]   ;;  %v1973_v10 = vsel %vm397_vm0, %v7457_v22, 0  ;;  %v7104_v22 = vld [vmem:[%s8029_s1 + $0x8] sm:$0x3] }
  0x8e   : > { %6296 = vmatprep.mubr.msk.bf16.mxu1 %vm342_vm1, %v854_v4  ;;  %6462 = vmatprep.mubr.msk.bf16.mxu0 %vm342_vm1, %v3551_v14  ;;  %v1374_v4 = vsel %vm1369_vm5, %v1371_v53, %v1373_v62  ;;  %v3566_v5 = vrot.slane %v7013_v63, 2  ;;  %v3579_v53 = vsel %vm3037_vm3, %v3576_v43, %v3578_v46  ;;  %v4070_v62 = vshrl.u32 %v7034_v52, 16 }
  0x8f   : > { %v4073_v63 = vshll.u32 %v7034_v52, 16 }
  0x90   : > { %v3567_v14 = vsel %vm3037_vm3, %v3564_v2, %v3566_v5  ;;  %v4062_v2 = vshrl.u32 %v7033_v56, 16  ;;  %v4072_v9 = vrot.slane %v4070_v62, 2 }
  0x95   : > { %6297 = vmatmul.mubr.msk.bf16.gmra.mrb[24].mxu1 %vm342_vm1, %v862_v20  ;;  %6463 = vmatmul.mubr.msk.bf16.vlgmr.msra.gmra.mrb[0].mxu0 %vm342_vm1, %v3553_v30  ;;  %v3570_v20 = vrot.slane %v7017_v15, 2  ;;  %v3572_v30 = vrot.slane %v7019_v25, 2  ;;  %v4091_v25 = vshll.u32 %v7038_v12, 16 }
  0x96   : > { %6300 = vmatprep.mubr.msk.bf16.mxu1 %vm342_vm1, %v870_v24  ;;  %6499 = vmatpush3.bf16.msra.mxu0 %v4286_v33  ;;  %v3569_v24 = vsel %vm3037_vm3, %v3566_v5, %v3568_v17  ;;  %v3574_v33 = vrot.slane %v7021_v28, 2  ;;  %v1393_v5 = vrot.slane %v7032_v58, 1  ;;  %v7040_v28 = vld [vmem:[%s7289_s11 + $0x30] sm:$0xff]  }
  0x97   : > { %6466 = vmatprep.mubr.msk.bf16.mxu0 %vm342_vm1, %v3555_v34  ;;  %6873 = vmatprep.subr.msk.bf16.mxu0 %vm397_vm0, %v7514_v38  ;;  %v3571_v27 = vsel %vm3037_vm3, %v3568_v17, %v3570_v20  ;;  %v1384_v34 = vsel %vm1369_vm5, %v1381_v26, %v1383_v29  ;;  %v3573_v37 = vsel %vm3037_vm3, %v3570_v20, %v3572_v30  ;;  %v7037_v17 = vld [vmem:[%s7289_s11 + $0x70] sm:$0xff]   ;;  %v4088_v20 = vshrl.u32 %v7038_v12, 16  ;;  %v7039_v26 = vld [vmem:[%s7289_s11 + $0x78] sm:$0xff]  }
  0x98   : > { %v4093_v35 = vrot.slane %v4091_v25, 3  ;;  %v7049_v12 = vld [vmem:[%s7289_s11 + $0x50] sm:$0xff]  }
  0x99   : > { %v4090_v32 = vrot.slane %v4088_v20, 2  ;;  %v4136_v20 = vshll.u32 %v7049_v12, 16 }
  0x9b   : > { %v4094_v45 = vor.u32 %v4093_v35, %v4090_v32  ;;  %v7053_v32 = vld [vmem:[%s7289_s11 + $0x60] sm:$0xff]  }
  0x9d   : > { %6301 = vmatmul.mubr.msk.bf16.gmra.mrb[28].mxu1 %vm342_vm1, %v878_v57  ;;  %6467 = vmatmul.mubr.msk.bf16.gmra.mrb[4].mxu0 %vm342_vm1, %v3557_v48  ;;  %v3575_v57 = vsel %vm3037_vm3, %v3572_v30, %v3574_v33  ;;  %v7030_v48 = vld [vmem:[%s7289_s11 + $0x58] sm:$0xff]  }
  0x9e   : > { %6304 = vmatprep.mubr.msk.bf16.mxu1 %vm342_vm1, %v886_v44  ;;  %6470 = vmatprep.mubr.msk.bf16.mxu0 %vm342_vm1, %v3559_v50  ;;  %v1386_v44 = vsel %vm1369_vm5, %v1383_v29, %v1385_v7  ;;  %v3577_v50 = vsel %vm3037_vm3, %v3574_v33, %v3576_v43  ;;  %v7042_v33 = vld [vmem:[%s7289_s11 + $0x38] sm:$0xff]   ;;  %v4097_v7 = vshrl.u32 %v7040_v28, 16 }
  0x9f   : > { %v4106_v43 = vshrl.u32 %v7042_v33, 16 }
  0xa5   : > { %6305 = vmatmul.mubr.msk.bf16.gmra.mrb[32].mxu1 %vm342_vm1, %v894_v55  ;;  %6471 = vmatmul.mubr.msk.bf16.gmra.mrb[8].mxu0 %vm342_vm1, %v3561_v61  ;;  %v1391_v55 = vrot.slane %v7030_v48, 1  ;;  %v7031_v61 = vld [vmem:[%s7289_s11 + $0xa0] ss:$0 sps:$4 sm:$0x33]   ;;  %v4099_v48 = vrot.slane %v4097_v7, 2 }
  0xa6   : > { %6310 = vmatprep.mubr.msk.bf16.mxu1 %vm342_vm1, %v1372_v59  ;;  %6474 = vmatprep.mubr.msk.bf16.mxu0 %vm342_vm1, %v3563_v0  ;;  %v3580_v59 = vrot.slane %v7027_v49, 2  ;;  %v3582_v0 = vrot.slane %v7029_v54, 2  ;;  %v3584_v16 = vrot.slane %v7031_v61, 2 }
  0xa7   : > { %v1392_v1 = vsel %vm1369_vm5, %v1389_v51, %v1391_v55  ;;  %v7044_v51 = vld [vmem:[%s7289_s11 + $0x40] sm:$0xff]  }
  0xa8   : > { %v3583_v13 = vsel %vm3037_vm3, %v3580_v59, %v3582_v0  ;;  %v3585_v29 = vsel %vm3037_vm3, %v3582_v0, %v3584_v16  ;;  %v4115_v62 = vshrl.u32 %v7044_v51, 16  ;;  %v7045_v0 = vld [vmem:[%s7289_s11 + $0x90] ss:$0 sps:$4 sm:$0x11]  }
  0xad   : > { %6311 = vmatmul.mubr.msk.bf16.vlgmr.msra.gmra.mrb[0].mxu1 %vm342_vm1, %v1374_v4  ;;  %6475 = vmatmul.mubr.msk.bf16.gmra.mrb[12].mxu0 %vm342_vm1, %v3565_v11  ;;  %v4065_v4 = vshll.u32 %v7033_v56, 16  ;;  %v1395_v11 = vrot.slane %v7035_v40, 1 }
  0xae   : > { %6314 = vmatprep.mubr.msk.bf16.mxu1 %vm342_vm1, %v1376_v8  ;;  %6347 = vmatpush3.bf16.msra.mxu1 %v1973_v10  ;;  %v3581_v8 = vsel %vm3037_vm3, %v3578_v46, %v3580_v59  ;;  %v4075_v10 = vrot.slane %v4073_v63, 3  ;;  %v7046_v59 = vld [vmem:[%s7289_s11 + $0x48] sm:$0xff]   ;;  %v4118_v63 = vshll.u32 %v7044_v51, 16 }
  0xaf   : > { %6869 = vmatprep.subr.msk.bf16.mxu1 %vm397_vm0, %v7104_v22  ;;  %6478 = vmatprep.mubr.msk.bf16.mxu0 %vm342_vm1, %v3567_v14  ;;  %v4064_v14 = vrot.slane %v4062_v2, 2  ;;  %v4067_v15 = vrot.slane %v4065_v4, 3  ;;  %v4079_v22 = vshrl.u32 %v7036_v6, 16  ;;  %v4127_v2 = vshll.u32 %v7046_v59, 16  ;;  %v7047_v4 = vld [vmem:[%s7289_s11 + $0x8] sm:$0xfe]  }
  0xb0   : > { %v4076_v23 = vor.u32 %v4075_v10, %v4072_v9  ;;  %v4117_v9 = vrot.slane %v4115_v62, 2  ;;  %v4120_v10 = vrot.slane %v4118_v63, 3  ;;  %v7058_v63 = vld [vmem:[%s7289_s11 + $0x38] sm:$0xff]  }
  0xb1   : > { %v4081_v30 = vrot.slane %v4079_v22, 2  ;;  %v7051_v22 = vld [vmem:[%s7289_s11 + $0x58] sm:$0xff]  }
  0xb2   : > { %v4142_v25 = vshrl.u32 %v7051_v22, 16 }
  0xb5   : > { %6315 = vmatmul.mubr.msk.bf16.gmra.mrb[4].mxu1 %vm342_vm1, %v1378_v18  ;;  %6479 = vmatmul.mubr.msk.bf16.gmra.mrb[16].mxu0 %vm342_vm1, %v3569_v24  ;;  %v1394_v18 = vsel %vm1369_vm5, %v1391_v55, %v1393_v5  ;;  %v1396_v24 = vsel %vm1369_vm5, %v1393_v5, %v1395_v11  ;;  %v4798_v55 = vsel %vm397_vm0, %v7514_v38, 0  ;;  %v7048_v5 = vld [vmem:[%s7289_s11 + $0x10] sm:$0xff]  }
  0xb6   : > { %6318 = vmatprep.mubr.msk.bf16.mxu1 %vm342_vm1, %v1380_v21  ;;  %6482 = vmatprep.mubr.msk.bf16.mxu0 %vm342_vm1, %v3571_v27  ;;  %v4068_v21 = vor.u32 %v4067_v15, %v4064_v14  ;;  %v1397_v27 = vrot.slane %v7037_v17, 1  ;;  %v4129_v14 = vrot.slane %v4127_v2, 3  ;;  %v1881_v15 = vrot.slane %v7047_v4, 1  ;;  %v7060_v2 = vld [vmem:[%s7289_s11 + $0x40] sm:$0xff]  }
  0xb7   : > { %v1882_v16 = vrot.slane %v7048_v5, 1  ;;  %v4121_v17 = vor.u32 %v4120_v10, %v4117_v9  ;;  %v7061_v9 = vld [vmem:[%s7289_s11 + $0x80] sm:$0xff]  }
  0xb8   : > { %v1398_v42 = vsel %vm1369_vm5, %v1395_v11, %v1397_v27  ;;  %v1405_v11 = vrot.slane %v7045_v0, 1 }
  0xbd   : > { %6319 = vmatmul.mubr.msk.bf16.gmra.mrb[8].mxu1 %vm342_vm1, %v1382_v31  ;;  %6483 = vmatmul.mubr.msk.bf16.gmra.mrb[20].mxu0 %vm342_vm1, %v3573_v37  ;;  %v4084_v31 = vrot.slane %v4082_v19, 3  ;;  %v1399_v37 = vrot.slane %v7039_v26, 1  ;;  %v4133_v19 = vshrl.u32 %v7049_v12, 16  ;;  %v4145_v26 = vshll.u32 %v7051_v22, 16 }
  0xbe   : > { %6322 = vmatprep.mubr.msk.bf16.mxu1 %vm342_vm1, %v1384_v34  ;;  %6486 = vmatprep.mubr.msk.bf16.mxu0 %vm342_vm1, %v3575_v57  ;;  %v4077_v34 = vsel %vm4060_vm6, %v4068_v21, %v4076_v23  ;;  %v4100_v57 = vshll.u32 %v7040_v28, 16  ;;  %v7050_v21 = vld [vmem:[%s7289_s11 + $0x18] sm:$0xff]   ;;  %v4187_v22 = vshrl.u32 %v7061_v9, 16 }
  0xbf   : > { %v4085_v41 = vor.u32 %v4084_v31, %v4081_v30  ;;  %v1400_v46 = vsel %vm1369_vm5, %v1397_v27, %v1399_v37  ;;  %v7052_v27 = vld [vmem:[%s7289_s11 + $0x20] sm:$0xff]   ;;  %v4138_v30 = vrot.slane %v4136_v20, 3  ;;  %v1884_v31 = vrot.slane %v7050_v21, 1 }
  0xc0   : > { %v4102_v49 = vrot.slane %v4100_v57, 3  ;;  %v4147_v35 = vrot.slane %v4145_v26, 3  ;;  %v4189_v26 = vrot.slane %v4187_v22, 2 }
  0xc1   : > { %v4086_v52 = vsel %vm4060_vm6, %v4076_v23, %v4085_v41  ;;  %v4095_v56 = vsel %vm4060_vm6, %v4085_v41, %v4094_v45  ;;  %v1885_v57 = vsel %vm1369_vm5, %v1882_v16, %v1884_v31  ;;  %v4151_v41 = vshrl.u32 %v7053_v32, 16 }
  0xc2   : > { %v4103_v40 = vor.u32 %v4102_v49, %v4099_v48  ;;  %v7056_v48 = vld [vmem:[%s7289_s11 + $0x30] sm:$0xff]  }
  0xc4   : > { %v4104_v6 = vsel %vm4060_vm6, %v4094_v45, %v4103_v40 }
  0xc5   : > { %6323 = vmatmul.mubr.msk.bf16.gmra.mrb[12].mxu1 %vm342_vm1, %v1386_v44  ;;  %6487 = vmatmul.mubr.msk.bf16.gmra.mrb[24].mxu0 %vm342_vm1, %v3577_v50  ;;  %v4109_v44 = vshll.u32 %v7042_v33, 16  ;;  %v1401_v50 = vrot.slane %v7041_v39, 1  ;;  %v7055_v39 = vld [vmem:[%s7289_s11 + $0x68] sm:$0xff]  }
  0xc6   : > { %6326 = vmatprep.mubr.msk.bf16.mxu1 %vm342_vm1, %v1388_v47  ;;  %6490 = vmatprep.mubr.msk.bf16.mxu0 %vm342_vm1, %v3579_v53  ;;  %v7043_v47 = vld [vmem:[%s7289_s11 + $0x88] sm:$0xff]   ;;  %v4108_v53 = vrot.slane %v4106_v43, 2 }
  0xc7   : > { %v4111_v54 = vrot.slane %v4109_v44, 3  ;;  %v1403_v58 = vrot.slane %v7043_v47, 1  ;;  %v7054_v43 = vld [vmem:[%s7289_s11 + $0x28] sm:$0xff]   ;;  %v4163_v47 = vshll.u32 %v7055_v39, 16 }
  0xc9   : > { %v4112_v61 = vor.u32 %v4111_v54, %v4108_v53  ;;  %v1404_v38 = vsel %vm1369_vm5, %v1401_v50, %v1403_v58  ;;  %v7057_v53 = vld [vmem:[%s7289_s11 + $0x70] sm:$0xff]  }
  0xca   : > { %v4172_v62 = vshll.u32 %v7057_v53, 16 }
  0xcb   : > { %v4122_v28 = vsel %vm4060_vm6, %v4112_v61, %v4121_v17 }
  0xcd   : > { %6327 = vmatmul.mubr.msk.bf16.gmra.mrb[16].mxu1 %vm342_vm1, %v1390_v60  ;;  %6491 = vmatmul.mubr.msk.bf16.gmra.mrb[28].mxu0 %vm342_vm1, %v3581_v8  ;;  %v1402_v60 = vsel %vm1369_vm5, %v1399_v37, %v1401_v50  ;;  %v4113_v8 = vsel %vm4060_vm6, %v4103_v40, %v4112_v61  ;;  %v1886_v37 = vrot.slane %v7052_v27, 1  ;;  %v4153_v50 = vrot.slane %v4151_v41, 2 }
  0xce   : > { %6330 = vmatprep.mubr.msk.bf16.mxu1 %vm342_vm1, %v1392_v1  ;;  %6494 = vmatprep.mubr.msk.bf16.mxu0 %vm342_vm1, %v3583_v13  ;;  %v4124_v1 = vshrl.u32 %v7046_v59, 16  ;;  %v7059_v59 = vld [vmem:[%s7289_s11 + $0x78] sm:$0xff]   ;;  %v4169_v61 = vshrl.u32 %v7057_v53, 16 }
  0xcf   : > { %v1887_v45 = vsel %vm1369_vm5, %v1884_v31, %v1886_v37 }
  0xd0   : > { %v4126_v13 = vrot.slane %v4124_v1, 2  ;;  %v4181_v1 = vshll.u32 %v7059_v59, 16  ;;  %v4171_v5 = vrot.slane %v4169_v61, 2 }
  0xd2   : > { %v4130_v23 = vor.u32 %v4129_v14, %v4126_v13  ;;  %v4183_v12 = vrot.slane %v4181_v1, 3  ;;  %v1894_v13 = vrot.slane %v7060_v2, 1  ;;  %v7063_v14 = vld [vmem:[%s7289_s11 + $0x88] sm:$0xff]   ;;  %v7071_v2 = vld [vmem:[%s7289_s11 + $0x10] sm:$0xf8]  }
  0xd3   : > { %v4196_v21 = vshrl.u32 %v7063_v14, 16 }
  0xd4   : > { %v4131_v33 = vsel %vm4060_vm6, %v4121_v17, %v4130_v23  ;;  %v4190_v17 = vshll.u32 %v7061_v9, 16  ;;  %v7075_v9 = vld [vmem:[%s7289_s11 + $0x78] sm:$0xff]  }
  0xd5   : > { %6331 = vmatmul.mubr.msk.bf16.gmra.mrb[20].mxu1 %vm342_vm1, %v1394_v18  ;;  %6495 = vmatmul.mubr.msk.bf16.gmra.mrb[32].mxu0 %vm342_vm1, %v3585_v29  ;;  %v1406_v18 = vsel %vm1369_vm5, %v1403_v58, %v1405_v11  ;;  %v4135_v29 = vrot.slane %v4133_v19, 2  ;;  %v1890_v58 = vrot.slane %v7056_v48, 1  ;;  %v4198_v31 = vrot.slane %v4196_v21, 2  ;;  %v7079_v21 = vld [vmem:[%s7289_s11 + $0x88] sm:$0xff]  }
  0xd6   : > { %6334 = vmatprep.mubr.msk.bf16.mxu1 %vm342_vm1, %v1396_v24  ;;  %6500 = vmatprep.mubr.msk.bf16.mxu0 %vm342_vm1, %v4077_v34  ;;  %v1883_v24 = vsel %vm1369_vm5, %v1881_v15, %v1882_v16  ;;  %v4144_v34 = vrot.slane %v4142_v25, 2  ;;  %v4192_v27 = vrot.slane %v4190_v17, 3  ;;  %v7076_v17 = vld [vmem:[%s7289_s11 + $0x28] sm:$0xff]  }
  0xd7   : > { %v4139_v7 = vor.u32 %v4138_v30, %v4135_v29  ;;  %v7065_v29 = vld [vmem:[%s7289_s11 + $0x90] sm:$0xff]  }
  0xd8   : > { %v4148_v44 = vor.u32 %v4147_v35, %v4144_v34  ;;  %v7067_v34 = vld [vmem:[%s7289_s11 + $0x98] sm:$0xff]   ;;  %v4193_v35 = vor.u32 %v4192_v27, %v4189_v26  ;;  %v7085_v26 = vld [vmem:[%s7289_s11 + $0x60] sm:$0xff]  }
  0xd9   : > { %v4140_v49 = vsel %vm4060_vm6, %v4130_v23, %v4139_v7  ;;  %v4199_v23 = vshll.u32 %v7063_v14, 16 }
  0xda   : > { %v4149_v54 = vsel %vm4060_vm6, %v4139_v7, %v4148_v44  ;;  %v4208_v7 = vshll.u32 %v7065_v29, 16 }
  0xdc   : > { %v4210_v48 = vrot.slane %v4208_v7, 3  ;;  %v7087_v7 = vld [vmem:[%s7289_s11 + $0x68] sm:$0xff]  }
  0xdd   : > { %6335 = vmatmul.mubr.msk.bf16.gmra.mrb[24].mxu1 %vm342_vm1, %v1398_v42  ;;  %6501 = vmatmul.mubr.msk.bf16.vlgmr.msra.gmra.mrb[0].mxu0 %vm342_vm1, %v4086_v52  ;;  %v4154_v42 = vshll.u32 %v7053_v32, 16  ;;  %v1888_v52 = vrot.slane %v7054_v43, 1  ;;  %v4201_v32 = vrot.slane %v4199_v23, 3  ;;  %v4214_v43 = vshrl.u32 %v7067_v34, 16 }
  0xde   : > { %6338 = vmatprep.mubr.msk.bf16.mxu1 %vm342_vm1, %v1400_v46  ;;  %6537 = vmatpush3.bf16.msra.mxu0 %v4798_v55  ;;  %v4160_v46 = vshrl.u32 %v7055_v39, 16  ;;  %v4205_v39 = vshrl.u32 %v7065_v29, 16  ;;  %v4711_v23 = vrot.slane %v7076_v17, 3  ;;  %v1912_v29 = vrot.slane %v7079_v21, 1 }
  0xdf   : > { %6504 = vmatprep.mubr.msk.bf16.mxu0 %vm342_vm1, %v4095_v56  ;;  %v4156_v51 = vrot.slane %v4154_v42, 3  ;;  %v4165_v56 = vrot.slane %v4163_v47, 3  ;;  %v1891_v0 = vsel %vm1369_vm5, %v1888_v52, %v1890_v58  ;;  %v4202_v41 = vor.u32 %v4201_v32, %v4198_v31  ;;  %v7080_v31 = vld [vmem:[%s7289_s11 + $0x38] sm:$0xff]  }
  0xe0   : > { %v4162_v55 = vrot.slane %v4160_v46, 2  ;;  %v4207_v47 = vrot.slane %v4205_v39, 2  ;;  %v7083_v39 = vld [vmem:[%s7289_s11 + $0x98] ss:$0 sps:$4 sm:$0x11]  }
  0xe1   : > { %v4157_v40 = vor.u32 %v4156_v51, %v4153_v50  ;;  %v7069_v50 = vld [vmem:[%s7289_s11 + $0xa0] ss:$0 sps:$4 sm:$0x77]   ;;  %v4203_v51 = vsel %vm4060_vm6, %v4193_v35, %v4202_v41 }
  0xe3   : > { %v4158_v4 = vsel %vm4060_vm6, %v4148_v44, %v4157_v40  ;;  %v4217_v44 = vshll.u32 %v7067_v34, 16  ;;  %v2495_v34 = vshll.u32 %v7085_v26, 16 }
  0xe5   : > { %6339 = vmatmul.mubr.msk.bf16.gmra.mrb[28].mxu1 %vm342_vm1, %v1402_v60  ;;  %6505 = vmatmul.mubr.msk.bf16.gmra.mrb[4].mxu0 %vm342_vm1, %v4104_v6  ;;  %v1889_v60 = vsel %vm1369_vm5, %v1886_v37, %v1888_v52  ;;  %v4174_v6 = vrot.slane %v4172_v62, 3  ;;  %v4216_v52 = vrot.slane %v4214_v43, 2  ;;  %v4219_v53 = vrot.slane %v4217_v44, 3  ;;  %v7073_v62 = vld [vmem:[%s7289_s11 + $0x70] sm:$0xff]  }
  0xe6   : > { %6342 = vmatprep.mubr.msk.bf16.mxu1 %vm342_vm1, %v1404_v38  ;;  %6508 = vmatprep.mubr.msk.bf16.mxu0 %vm342_vm1, %v4113_v8  ;;  %v4178_v38 = vshrl.u32 %v7059_v59, 16  ;;  %v1892_v8 = vrot.slane %v7058_v63, 1  ;;  %v4226_v59 = vshll.u32 %v7069_v50, 16  ;;  %v2497_v43 = vrot.slane %v2495_v34, 2  ;;  %v7089_v44 = vld [vmem:[%s7289_s11 + $0x70] sm:$0xff]  }
  0xe7   : > { %v4175_v15 = vor.u32 %v4174_v6, %v4171_v5  ;;  %v1906_v5 = vrot.slane %v7073_v62, 1  ;;  %v7099_v34 = vld [vmem:[%s7289_s11 + $0x98] ss:$0 sps:$4 sm:$0x33]  }
  0xe8   : > { %v4180_v11 = vrot.slane %v4178_v38, 2  ;;  %v1893_v16 = vsel %vm1369_vm5, %v1890_v58, %v1892_v8  ;;  %v1895_v20 = vsel %vm1369_vm5, %v1892_v8, %v1894_v13  ;;  %v4223_v58 = vshrl.u32 %v7069_v50, 16 }
  0xea   : > { %v4184_v19 = vor.u32 %v4183_v12, %v4180_v11 }
  0xec   : > { %v4185_v30 = vsel %vm4060_vm6, %v4175_v15, %v4184_v19  ;;  %v4194_v46 = vsel %vm4060_vm6, %v4184_v19, %v4193_v35 }
  0xed   : > { %6343 = vmatmul.mubr.msk.bf16.gmra.mrb[32].mxu1 %vm342_vm1, %v1406_v18  ;;  %6509 = vmatmul.mubr.msk.bf16.gmra.mrb[8].mxu0 %vm342_vm1, %v4122_v28  ;;  %v7062_v18 = vld [vmem:[%s7289_s11 + $0x48] sm:$0xff]  }
  0xee   : > { %6348 = vmatprep.mubr.msk.bf16.mxu1 %vm342_vm1, %v1883_v24  ;;  %6512 = vmatprep.mubr.msk.bf16.mxu0 %vm342_vm1, %v4131_v33  ;;  %v7064_v24 = vld [vmem:[%s7289_s11 + $0x50] sm:$0xff]   ;;  %v1896_v28 = vrot.slane %v7062_v18, 1 }
  0xef   : > { %v1898_v33 = vrot.slane %v7064_v24, 1 }
  0xf0   : > { %v1897_v37 = vsel %vm1369_vm5, %v1894_v13, %v1896_v28  ;;  %v7077_v13 = vld [vmem:[%s7289_s11 + $0x80] sm:$0xff]  }
  0xf1   : > { %v1899_v42 = vsel %vm1369_vm5, %v1896_v28, %v1898_v33  ;;  %v1910_v18 = vrot.slane %v7077_v13, 1  ;;  %v7078_v28 = vld [vmem:[%s7289_s11 + $0x30] sm:$0xff]  }
  0xf2   : > { %v4713_v35 = vrot.slane %v7078_v28, 3 }
  0xf5   : > { %6349 = vmatmul.mubr.msk.bf16.vlgmr.msra.gmra.mrb[0].mxu1 %vm342_vm1, %v1885_v57  ;;  %6513 = vmatmul.mubr.msk.bf16.gmra.mrb[12].mxu0 %vm342_vm1, %v4140_v49  ;;  %v7066_v57 = vld [vmem:[%s7289_s11 + $0x58] sm:$0xff]  }
  0xf6   : > { %6352 = vmatprep.mubr.msk.bf16.mxu1 %vm342_vm1, %v1887_v45  ;;  %6575 = vmatpush3.bf16.msra.mxu1 %v7275_v3  ;;  %v4166_v3 = vor.u32 %v4165_v56, %v4162_v55  ;;  %v7068_v45 = vld [vmem:[%s7289_s11 + $0x60] sm:$0xff]   ;;  %v1900_v49 = vrot.slane %v7066_v57, 1  ;;  %v4211_v55 = vor.u32 %v4210_v48, %v4207_v47  ;;  %v4715_v57 = vrot.slane %v7080_v31, 3 }
  0xf7   : > { %6516 = vmatprep.mubr.msk.bf16.mxu0 %vm342_vm1, %v4149_v54  ;;  %v1902_v54 = vrot.slane %v7068_v45, 1  ;;  %v4714_v45 = vsel %vm4705_vm7, %v4711_v23, %v4713_v35  ;;  %v1916_v47 = vrot.slane %v7083_v39, 1  ;;  %v2501_v48 = vshrl.u32 %v7087_v7, 16 }
  0xf8   : > { %v4167_v10 = vsel %vm4060_vm6, %v4157_v40, %v4166_v3  ;;  %v4176_v25 = vsel %vm4060_vm6, %v4166_v3, %v4175_v15  ;;  %v1901_v56 = vsel %vm1369_vm5, %v1898_v33, %v1900_v49  ;;  %v7070_v40 = vld [vmem:[%s7289_s11 + $0x68] sm:$0xff]   ;;  %v4212_v63 = vsel %vm4060_vm6, %v4202_v41, %v4211_v55  ;;  %v7074_v15 = vld [vmem:[%s7289_s11 + $0x20] sm:$0xff]  }
  0xf9   : > { %v1903_v61 = vsel %vm1369_vm5, %v1900_v49, %v1902_v54  ;;  %v4225_v3 = vrot.slane %v4223_v58, 2  ;;  %v1904_v38 = vrot.slane %v7070_v40, 1  ;;  %v4709_v19 = vrot.slane %v7074_v15, 3  ;;  %v7091_v40 = vld [vmem:[%s7289_s11 + $0x78] sm:$0xff]  }
  0xfa   : > { %v2492_v33 = vshrl.u32 %v7085_v26, 16  ;;  %v2504_v49 = vshll.u32 %v7087_v7, 16  ;;  %v4716_v50 = vsel %vm4705_vm7, %v4713_v35, %v4715_v57  ;;  %v2503_v58 = vrot.slane %v2501_v48, 1  ;;  %v7092_v26 = vld [vmem:[%s7289_s11 + $0x68] sm:$0xff]  }
  0xfb   : > { %v1905_v8 = vsel %vm1369_vm5, %v1902_v54, %v1904_v38  ;;  %v1907_v12 = vsel %vm1369_vm5, %v1904_v38, %v1906_v5  ;;  %v2513_v54 = vshll.u32 %v7089_v44, 16  ;;  %v7086_v38 = vld [vmem:[%s7289_s11 + $0x50] sm:$0xff]   ;;  %v4727_v35 = vrot.slane %v7092_v26, 3 }
  0xfd   : > { %6353 = vmatmul.mubr.msk.bf16.gmra.mrb[4].mxu1 %vm342_vm1, %v1889_v60  ;;  %6517 = vmatmul.mubr.msk.bf16.gmra.mrb[16].mxu0 %vm342_vm1, %v4158_v4  ;;  %v4220_v60 = vor.u32 %v4219_v53, %v4216_v52  ;;  %v7072_v4 = vld [vmem:[%s7289_s11 + $0x18] sm:$0xff]   ;;  %v2510_v53 = vshrl.u32 %v7089_v44, 16  ;;  %v2558_v44 = vshll.u32 %v7099_v34, 16 }
  0xfe   : > { %6356 = vmatprep.mubr.msk.bf16.mxu1 %vm342_vm1, %v1891_v0  ;;  %6520 = vmatprep.mubr.msk.bf16.mxu0 %vm342_vm1, %v4167_v10  ;;  %v4228_v0 = vrot.slane %v4226_v59, 3  ;;  %v4706_v10 = vrot.slane %v7071_v2, 3  ;;  %v4707_v11 = vrot.slane %v7072_v4, 3  ;;  %v2506_v59 = vrot.slane %v2504_v49, 2 }
  0xff   : > { %v4221_v1 = vsel %vm4060_vm6, %v4211_v55, %v4220_v60  ;;  %v2512_v62 = vrot.slane %v2510_v53, 1  ;;  %v2519_v2 = vshrl.u32 %v7091_v40, 16  ;;  %v2522_v4 = vshll.u32 %v7091_v40, 16 }
 0x100   : > { %v4229_v6 = vor.u32 %v4228_v0, %v4225_v3  ;;  %v4708_v22 = vsel %vm4705_vm7, %v4706_v10, %v4707_v11  ;;  %v4710_v27 = vsel %vm4705_vm7, %v4707_v11, %v4709_v19  ;;  %v7093_v3 = vld [vmem:[%s7289_s11 + $0x80] sm:$0xff]   ;;  %v4721_v10 = vrot.slane %v7086_v38, 3 }
 0x101   : > { %v2524_v13 = vrot.slane %v2522_v4, 2  ;;  %v7103_v4 = vld [vmem:[%s7289_s11 + $0xa0] ss:$0 sps:$4 sm:$0x77]  }
 0x102   : > { %v4230_v14 = vsel %vm4060_vm6, %v4220_v60, %v4229_v6  ;;  %v7088_v6 = vld [vmem:[%s7289_s11 + $0x58] sm:$0xff]  }
 0x103   : > { %v4723_v15 = vrot.slane %v7088_v6, 3  ;;  %v4741_v6 = vrot.slane %v7103_v4, 3 }
 0x105   : > { %6357 = vmatmul.mubr.msk.bf16.gmra.mrb[8].mxu1 %vm342_vm1, %v1893_v16  ;;  %6521 = vmatmul.mubr.msk.bf16.gmra.mrb[20].mxu0 %vm342_vm1, %v4176_v25  ;;  %v1908_v16 = vrot.slane %v7075_v9, 1  ;;  %v7081_v25 = vld [vmem:[%s7289_s11 + $0x90] sm:$0xff]   ;;  %v2531_v9 = vshll.u32 %v7093_v3, 16 }
 0x106   : > { %6360 = vmatprep.mubr.msk.bf16.mxu1 %vm342_vm1, %v1895_v20  ;;  %6524 = vmatprep.mubr.msk.bf16.mxu0 %vm342_vm1, %v4185_v30  ;;  %v4712_v30 = vsel %vm4705_vm7, %v4709_v19, %v4711_v23  ;;  %v1914_v32 = vrot.slane %v7081_v25, 1  ;;  %v4724_v25 = vsel %vm4705_vm7, %v4721_v10, %v4723_v15 }
 0x107   : > { %v1909_v20 = vsel %vm1369_vm5, %v1906_v5, %v1908_v16  ;;  %v1911_v24 = vsel %vm1369_vm5, %v1908_v16, %v1910_v18  ;;  %v2533_v17 = vrot.slane %v2531_v9, 2 }
 0x108   : > { %v1915_v41 = vsel %vm1369_vm5, %v1912_v29, %v1914_v32 }
 0x10d   : > { %6361 = vmatmul.mubr.msk.bf16.gmra.mrb[12].mxu1 %vm342_vm1, %v1897_v37  ;;  %6525 = vmatmul.mubr.msk.bf16.gmra.mrb[24].mxu0 %vm342_vm1, %v4194_v46  ;;  %v1913_v37 = vsel %vm1369_vm5, %v1910_v18, %v1912_v29  ;;  %v7082_v46 = vld [vmem:[%s7289_s11 + $0x40] sm:$0xff]   ;;  %v7097_v18 = vld [vmem:[%s7289_s11 + $0x90] sm:$0xff]  }
 0x10e   : > { %6364 = vmatprep.mubr.msk.bf16.mxu1 %vm342_vm1, %v1899_v42  ;;  %6528 = vmatprep.mubr.msk.bf16.mxu0 %vm342_vm1, %v4203_v51  ;;  %v2494_v42 = vrot.slane %v2492_v33, 1  ;;  %v7084_v51 = vld [vmem:[%s7289_s11 + $0x48] sm:$0xff]   ;;  %v4717_v55 = vrot.slane %v7082_v46, 3  ;;  %v2546_v28 = vshrl.u32 %v7097_v18, 16  ;;  %v2549_v29 = vshll.u32 %v7097_v18, 16  ;;  %v7096_v46 = vld [vmem:[%s7289_s11 + $0x78] sm:$0xff]  }
 0x10f   : > { %v4719_v60 = vrot.slane %v7084_v51, 3  ;;  %v2560_v51 = vrot.slane %v2558_v44, 2 }
 0x110   : > { %v2498_v52 = vor.u32 %v2497_v43, %v2494_v42  ;;  %v4718_v0 = vsel %vm4705_vm7, %v4715_v57, %v4717_v55  ;;  %v2548_v39 = vrot.slane %v2546_v28, 1  ;;  %v2551_v7 = vrot.slane %v2549_v29, 2  ;;  %v7850_v29 = vld [vmem:[%s8030_s2] ss:$0 sm:$0xff] }
 0x111   : > { %v4720_v5 = vsel %vm4705_vm7, %v4717_v55, %v4719_v60  ;;  %v4722_v19 = vsel %vm4705_vm7, %v4719_v60, %v4721_v10  ;;  %v2555_v43 = vshrl.u32 %v7099_v34, 16  ;;  %v7098_v55 = vld [vmem:[%s7289_s11 + $0x80] sm:$0xff]  }
 0x112   : > { %v4733_v40 = vrot.slane %v7098_v55, 3 }
 0x115   : > { %6365 = vmatmul.mubr.msk.bf16.gmra.mrb[16].mxu1 %vm342_vm1, %v1901_v56  ;;  %6529 = vmatmul.mubr.msk.bf16.gmra.mrb[28].mxu0 %vm342_vm1, %v4212_v63  ;;  %v1917_v56 = vsel %vm1369_vm5, %v1914_v32, %v1916_v47  ;;  %v2515_v63 = vrot.slane %v2513_v54, 2  ;;  %v2552_v47 = vor.u32 %v2551_v7, %v2548_v39 }
 0x116   : > { %6368 = vmatprep.mubr.msk.bf16.mxu1 %vm342_vm1, %v1903_v61  ;;  %6532 = vmatprep.mubr.msk.bf16.mxu0 %vm342_vm1, %v4221_v1  ;;  %v2499_v61 = vsel %vm2392_vm2, %v7361_v36, %v2498_v52  ;;  %v2507_v1 = vor.u32 %v2506_v59, %v2503_v58  ;;  %v2528_v36 = vshrl.u32 %v7093_v3, 16  ;;  %v7100_v59 = vld [vmem:[%s7289_s11 + $0x88] sm:$0xff]  }
 0x118   : > { %v2508_v11 = vsel %vm2392_vm2, %v2498_v52, %v2507_v1  ;;  %v4731_v52 = vrot.slane %v7096_v46, 3 }
 0x11d   : > { %6369 = vmatmul.mubr.msk.bf16.gmra.mrb[20].mxu1 %vm342_vm1, %v1905_v8  ;;  %6533 = vmatmul.mubr.msk.bf16.gmra.mrb[32].mxu0 %vm342_vm1, %v4230_v14  ;;  %v2516_v8 = vor.u32 %v2515_v63, %v2512_v62  ;;  %v7095_v14 = vld [vmem:[%s7289_s11 + $0x88] sm:$0xff]   ;;  %v4734_v62 = vsel %vm4705_vm7, %v4731_v52, %v4733_v40  ;;  %v7101_v63 = vld [vmem:[%s7289_s11 + $0x90] sm:$0xff]  }
 0x11e   : > { %6372 = vmatprep.mubr.msk.bf16.mxu1 %vm342_vm1, %v1907_v12  ;;  %6538 = vmatprep.mubr.msk.bf16.mxu0 %vm342_vm1, %v4708_v22  ;;  %v2521_v12 = vrot.slane %v2519_v2, 1  ;;  %v2530_v22 = vrot.slane %v2528_v36, 1  ;;  %v2537_v23 = vshrl.u32 %v7095_v14, 16  ;;  %v4737_v38 = vrot.slane %v7101_v63, 3 }
 0x11f   : > { %v2517_v16 = vsel %vm2392_vm2, %v2507_v1, %v2516_v8 }
 0x120   : > { %v2525_v21 = vor.u32 %v2524_v13, %v2521_v12  ;;  %v2539_v32 = vrot.slane %v2537_v23, 1 }
 0x122   : > { %v2526_v31 = vsel %vm2392_vm2, %v2516_v8, %v2525_v21 }
 0x125   : > { %6373 = vmatmul.mubr.msk.bf16.gmra.mrb[24].mxu1 %vm342_vm1, %v1909_v20  ;;  %6539 = vmatmul.mubr.msk.bf16.vlgmr.msra.gmra.mrb[0].mxu0 %vm342_vm1, %v4710_v27  ;;  %v7090_v20 = vld [vmem:[%s7289_s11 + $0x60] sm:$0xff]   ;;  %v2534_v27 = vor.u32 %v2533_v17, %v2530_v22 }
 0x126   : > { %6376 = vmatprep.mubr.msk.bf16.mxu1 %vm342_vm1, %v1911_v24  ;;  %6542 = vmatprep.mubr.msk.bf16.mxu0 %vm342_vm1, %v4712_v30  ;;  %v2540_v24 = vshll.u32 %v7095_v14, 16  ;;  %v4725_v30 = vrot.slane %v7090_v20, 3 }
 0x128   : > { %v2542_v33 = vrot.slane %v2540_v24, 2  ;;  %v4726_v57 = vsel %vm4705_vm7, %v4723_v15, %v4725_v30 }
 0x12a   : > { %v2543_v42 = vor.u32 %v2542_v33, %v2539_v32 }
 0x12c   : > { %v2544_v49 = vsel %vm2392_vm2, %v2534_v27, %v2543_v42  ;;  %v2553_v53 = vsel %vm2392_vm2, %v2543_v42, %v2552_v47 }
 0x12d   : > { %6377 = vmatmul.mubr.msk.bf16.gmra.mrb[28].mxu1 %vm342_vm1, %v1913_v37  ;;  %6543 = vmatmul.mubr.msk.bf16.gmra.mrb[4].mxu0 %vm342_vm1, %v4714_v45  ;;  %v2535_v37 = vsel %vm2392_vm2, %v2525_v21, %v2534_v27  ;;  %v4728_v45 = vsel %vm4705_vm7, %v4725_v30, %v4727_v35 }
 0x12e   : > { %6380 = vmatprep.mubr.msk.bf16.mxu1 %vm342_vm1, %v1915_v41  ;;  %6546 = vmatprep.mubr.msk.bf16.mxu0 %vm342_vm1, %v4716_v50  ;;  %v7094_v41 = vld [vmem:[%s7289_s11 + $0x70] sm:$0xff]   ;;  %v2557_v50 = vrot.slane %v2555_v43, 1 }
 0x12f   : > { %v4729_v48 = vrot.slane %v7094_v41, 3 }
 0x131   : > { %v4730_v54 = vsel %vm4705_vm7, %v4727_v35, %v4729_v48  ;;  %v4732_v58 = vsel %vm4705_vm7, %v4729_v48, %v4731_v52 }
 0x135   : > { %6381 = vmatmul.mubr.msk.bf16.gmra.mrb[32].mxu1 %vm342_vm1, %v1917_v56  ;;  %6547 = vmatmul.mubr.msk.bf16.gmra.mrb[8].mxu0 %vm342_vm1, %v4718_v0  ;;  %v2561_v56 = vor.u32 %v2560_v51, %v2557_v50  ;;  %v7102_v0 = vld [vmem:[%s7289_s11 + $0x98] sm:$0xff]   ;;  %s7859_s11 = scalar_lea.vmem [#allocation3], %s6874_s10 }
 0x136   : > { %6406 = vmatprep.mubr.msk.bf16.mxu1 %vm342_vm1, %v2499_v61  ;;  %6550 = vmatprep.mubr.msk.bf16.mxu0 %vm342_vm1, %v4720_v5  ;;  %v4735_v61 = vrot.slane %v7100_v59, 3  ;;  %v4739_v1 = vrot.slane %v7102_v0, 3  ;;  %s5431_s19 = sshll.u32 %s7859_s11, 4  ;;  %s7976_s19 = int_to_ptr.vmem [resolvable:$true] %s5431_s19 }
 0x137   : > { %v2562_v60 = vsel %vm2392_vm2, %v2552_v47, %v2561_v56  ;;  %s7105_s27 = scalar_lea.vmem %s7976_s19, 2304  ;;  %p7112_p1 = scmp.lt.s32.totalorder %s7976_s19, %s7110_s29 }
 0x138   : > { %v4736_v3 = vsel %vm4705_vm7, %v4733_v40, %v4735_v61  ;;  %v4738_v2 = vsel %vm4705_vm7, %v4735_v61, %v4737_v38  ;;  %v4740_v5 = vsel %vm4705_vm7, %v4737_v38, %v4739_v1  ;;  %v4742_v8 = vsel %vm4705_vm7, %v4739_v1, %v4741_v6  ;;  %p7106_p12 = scmp.ne.s32.totalorder %s7976_s19, %s7105_s27  ;;  %p7113_p2 = scmp.lt.s32.totalorder %s7111_s30, %s7105_s27 }
 0x13a   : > { %p7107_p13 = pnand %p7106_p12, %p7248_p4  ;;  %p7114_p3 = por %p7113_p2, %p7112_p1 }
 0x13c   : > { %p7108_p0 = pneg %p7107_p13 }
 0x13d   : > { %6407 = vmatmul.mubr.msk.bf16.vlgmr.msra.gmra.mrb[20].mxu1 %vm342_vm1, %v2508_v11  ;;  %6551 = vmatmul.mubr.msk.bf16.gmra.mrb[12].mxu0 %vm342_vm1, %v4722_v19 }
 0x13e   : > { %6410 = vmatprep.mubr.msk.bf16.mxu1 %vm342_vm1, %v2517_v16  ;;  %6554 = vmatprep.mubr.msk.bf16.mxu0 %vm342_vm1, %v4724_v25  ;;  %p7115_p5 = pnand %p7114_p3, %p7108_p0 }
 0x145   : > { %6411 = vmatmul.mubr.msk.bf16.gmra.mrb[24].mxu1 %vm342_vm1, %v2526_v31  ;;  %6555 = vmatmul.mubr.msk.bf16.gmra.mrb[16].mxu0 %vm342_vm1, %v4726_v57 }
 0x146   : > { %6414 = vmatprep.mubr.msk.bf16.mxu1 %vm342_vm1, %v2535_v37  ;;  %6558 = vmatprep.mubr.msk.bf16.mxu0 %vm342_vm1, %v4728_v45 }
 0x14d   : > { %6415 = vmatmul.mubr.msk.bf16.gmra.mrb[28].mxu1 %vm342_vm1, %v2544_v49  ;;  %6559 = vmatmul.mubr.msk.bf16.gmra.mrb[20].mxu0 %vm342_vm1, %v4730_v54 }
 0x14e   : > { %6418 = vmatprep.mubr.msk.bf16.mxu1 %vm342_vm1, %v2553_v53  ;;  %6562 = vmatprep.mubr.msk.bf16.mxu0 %vm342_vm1, %v4732_v58 }
 0x155   : > { %6419 = vmatmul.mubr.msk.bf16.gmra.mrb[32].mxu1 %vm342_vm1, %v2562_v60  ;;  %6563 = vmatmul.mubr.msk.bf16.gmra.mrb[24].mxu0 %vm342_vm1, %v4734_v62 }
 0x156   : > { %6566 = vmatprep.mubr.msk.bf16.mxu0 %vm342_vm1, %v4736_v3 }
 0x15d   : > { %6567 = vmatmul.mubr.msk.bf16.gmra.mrb[28].mxu0 %vm342_vm1, %v4738_v2 }
 0x15e   : > { %6570 = vmatprep.mubr.msk.bf16.mxu0 %vm342_vm1, %v4740_v5 }
 0x165   : > { %6571 = vmatmul.mubr.msk.bf16.gmra.mrb[32].mxu0 %vm342_vm1, %v4742_v8 }
 0x1c8   : > { %v6350_v36 = vpop.f32.mrb[0].mxu1 }
 0x1c9   : > { %v2009_v9 = vpop.f32.mrb[1].mxu1 }
 0x1ca   : > { %v6351_v10 = vpop.f32.mrb[2].mxu1 }
 0x1cb   : > { %v2012_v11 = vpop.f32.mrb[3].mxu1 }
 0x1d0   : > { %v6354_v12 = vpop.f32.mrb[4].mxu1 }
 0x1d1   : > { %v2025_v13 = vpop.f32.mrb[5].mxu1 }
 0x1d2   : > { %v6355_v14 = vpop.f32.mrb[6].mxu1 }
 0x1d3   : > { %v2028_v15 = vpop.f32.mrb[7].mxu1 }
 0x1d8   : > { %v7823_v16 = vpop.f32.mrb[8].mxu1 }
 0x1d9   : > { %v7825_v22 = vpop.f32.mrb[9].mxu1 }
 0x1da   : > { %v7827_v17 = vpop.f32.mrb[10].mxu1 }
 0x1db   : > { %v7829_v18 = vpop.f32.mrb[11].mxu1 }
 0x1e0   : > { %v7831_v19 = vpop.f32.mrb[12].mxu1 }
 0x1e1   : > { %v7833_v20 = vpop.f32.mrb[13].mxu1 }
 0x1e2   : > { %v7835_v21 = vpop.f32.mrb[14].mxu1 }
 0x1e3   : > { %v7837_v23 = vpop.f32.mrb[15].mxu1 }
 0x1e8   : > { %v7839_v24 = vpop.f32.mrb[16].mxu1 }
 0x1e9   : > { %v7841_v25 = vpop.f32.mrb[17].mxu1 }
 0x1ea   : > { %v7843_v26 = vpop.f32.mrb[18].mxu1 }
 0x1eb   : > { %v7845_v27 = vpop.f32.mrb[19].mxu1 }
 0x1f8   : > { %v6540_v28 = vpop.f32.mrb[0].mxu0 }
 0x1f9   : > { %v6576_v30 = vadd.f32 %v6540_v28, %v6350_v36  ;;  %v4834_v31 = vpop.f32.mrb[1].mxu0 }
 0x1fa   : > { %v6577_v32 = vadd.f32 %v4834_v31, %v2009_v9  ;;  %v6541_v33 = vpop.f32.mrb[2].mxu0 }
 0x1fb   : > { %v5166_v34 = vmul.f32 %v6576_v30, %v7850_v29  ;;  %v6578_v35 = vadd.f32 %v6541_v33, %v6351_v10  ;;  %v4837_v37 = vpop.f32.mrb[3].mxu0  ;;  %vm5123_vm8 = vcmp.ge.f32.partialorder %v6576_v30, 0.0 }
 0x1fc   : > { %v5164_v39 = vmul.f32 %v6577_v32, %v7850_v29  ;;  %v6579_v7 = vadd.f32 %v4837_v37, %v2012_v11  ;;  %vm5121_vm9 = vcmp.ge.f32.partialorder %v6577_v32, 0.0 }
 0x1fd   : > { %vm5124_vm10 = vcmp.ge.f32.partialorder %v6578_v35, 0.0  ;;  %v5167_v57 = vmul.f32 %v6578_v35, %v7850_v29  ;;  %v5202_v42 = vsel %vm5123_vm8, %v6576_v30, %v5166_v34 }
 0x1fe   : > { %vm5122_vm11 = vcmp.ge.f32.partialorder %v6579_v7, 0.0  ;;  %v5165_v41 = vmul.f32 %v6579_v7, %v7850_v29  ;;  %v5200_v44 = vsel %vm5121_vm9, %v6577_v32, %v5164_v39 }
 0x1ff   : > { %v5203_v43 = vsel %vm5124_vm10, %v6578_v35, %v5167_v57 }
 0x200   : > { %v5962_v45 = vpack.c.bf16 %v5203_v43, %v5202_v42  ;;  %v5201_v46 = vsel %vm5122_vm11, %v6579_v7, %v5165_v41  ;;  %v6544_v47 = vpop.f32.mrb[4].mxu0 }
 0x201   : > { %v5957_v48 = vpack.c.bf16 %v5201_v46, %v5200_v44  ;;  %v6580_v49 = vadd.f32 %v6544_v47, %v6354_v12  ;;  %v4850_v50 = vpop.f32.mrb[5].mxu0 }
 0x202   : > { %6044 = vst [vmem:[%s7859_s11 + $0x8] sm:$0xff] %v5962_v45   ;;  %v6581_v51 = vadd.f32 %v4850_v50, %v2025_v13  ;;  %v6545_v52 = vpop.f32.mrb[6].mxu0 }
 0x203   : > { %5958 = vst [vmem:[%s7859_s11] sm:$0xff] %v5957_v48   ;;  %v5170_v53 = vmul.f32 %v6580_v49, %v7850_v29  ;;  %v6582_v54 = vadd.f32 %v6545_v52, %v6355_v14  ;;  %v4853_v55 = vpop.f32.mrb[7].mxu0  ;;  %vm5127_vm12 = vcmp.ge.f32.partialorder %v6580_v49, 0.0 }
 0x204   : > { %v5168_v56 = vmul.f32 %v6581_v51, %v7850_v29  ;;  %v6583_v58 = vadd.f32 %v4853_v55, %v2028_v15  ;;  %vm5125_vm13 = vcmp.ge.f32.partialorder %v6581_v51, 0.0 }
 0x205   : > { %vm5128_vm14 = vcmp.ge.f32.partialorder %v6582_v54, 0.0  ;;  %v5171_v59 = vmul.f32 %v6582_v54, %v7850_v29  ;;  %v5206_v60 = vsel %vm5127_vm12, %v6580_v49, %v5170_v53 }
 0x206   : > { %vm5126_vm15 = vcmp.ge.f32.partialorder %v6583_v58, 0.0  ;;  %v5169_v40 = vmul.f32 %v6583_v58, %v7850_v29  ;;  %v5204_v62 = vsel %vm5125_vm13, %v6581_v51, %v5168_v56 }
 0x207   : > { %v5207_v61 = vsel %vm5128_vm14, %v6582_v54, %v5171_v59 }
 0x208   : > { %v5972_v63 = vpack.c.bf16 %v5207_v61, %v5206_v60  ;;  %v5205_v3 = vsel %vm5126_vm15, %v6583_v58, %v5169_v40  ;;  %v6548_v0 = vpop.f32.mrb[8].mxu0 }
 0x209   : > { %v5967_v38 = vpack.c.bf16 %v5205_v3, %v5204_v62  ;;  %v6584_v1 = vadd.f32 %v6548_v0, %v7823_v16  ;;  %v4866_v2 = vpop.f32.mrb[9].mxu0 }
 0x20a   : > { %6046 = vst [vmem:[%s7859_s11 + $0x18] sm:$0xff] %v5972_v63   ;;  %v6585_v4 = vadd.f32 %v4866_v2, %v7825_v22  ;;  %v6549_v5 = vpop.f32.mrb[10].mxu0 }
 0x20b   : > { %6045 = vst [vmem:[%s7859_s11 + $0x10] sm:$0xff] %v5967_v38   ;;  %v5174_v6 = vmul.f32 %v6584_v1, %v7850_v29  ;;  %v6586_v8 = vadd.f32 %v6549_v5, %v7827_v17  ;;  %v4869_v36 = vpop.f32.mrb[11].mxu0  ;;  %vm5131_vm0 = vcmp.ge.f32.partialorder %v6584_v1, 0.0 }
 0x20c   : > { %v5172_v9 = vmul.f32 %v6585_v4, %v7850_v29  ;;  %v6587_v10 = vadd.f32 %v4869_v36, %v7829_v18  ;;  %vm5129_vm1 = vcmp.ge.f32.partialorder %v6585_v4, 0.0 }
 0x20d   : > { %vm5132_vm2 = vcmp.ge.f32.partialorder %v6586_v8, 0.0  ;;  %v5175_v12 = vmul.f32 %v6586_v8, %v7850_v29  ;;  %v5210_v16 = vsel %vm5131_vm0, %v6584_v1, %v5174_v6 }
 0x20e   : > { %vm5130_vm3 = vcmp.ge.f32.partialorder %v6587_v10, 0.0  ;;  %v5173_v14 = vmul.f32 %v6587_v10, %v7850_v29  ;;  %v5208_v18 = vsel %vm5129_vm1, %v6585_v4, %v5172_v9 }
 0x20f   : > { %v5211_v22 = vsel %vm5132_vm2, %v6586_v8, %v5175_v12 }
 0x210   : > { %v7875_v11 = vpop.f32.mrb[20].mxu1  ;;  %v5982_v28 = vpack.c.bf16 %v5211_v22, %v5210_v16  ;;  %v5209_v30 = vsel %vm5130_vm3, %v6587_v10, %v5173_v14  ;;  %v6552_v31 = vpop.f32.mrb[12].mxu0 }
 0x211   : > { %v7878_v13 = vpop.f32.mrb[21].mxu1  ;;  %v5977_v32 = vpack.c.bf16 %v5209_v30, %v5208_v18  ;;  %v6588_v33 = vadd.f32 %v6552_v31, %v7831_v19  ;;  %v4882_v34 = vpop.f32.mrb[13].mxu0 }
 0x212   : > { %v7881_v15 = vpop.f32.mrb[22].mxu1  ;;  %6048 = vst [vmem:[%s7859_s11 + $0x28] sm:$0xff] %v5982_v28   ;;  %v6589_v35 = vadd.f32 %v4882_v34, %v7833_v20  ;;  %v6553_v37 = vpop.f32.mrb[14].mxu0 }
 0x213   : > { %v7883_v17 = vpop.f32.mrb[23].mxu1  ;;  %6047 = vst [vmem:[%s7859_s11 + $0x20] sm:$0xff] %v5977_v32   ;;  %v5178_v39 = vmul.f32 %v6588_v33, %v7850_v29  ;;  %v6590_v7 = vadd.f32 %v6553_v37, %v7835_v21  ;;  %v4885_v57 = vpop.f32.mrb[15].mxu0  ;;  %vm5135_vm4 = vcmp.ge.f32.partialorder %v6588_v33, 0.0 }
 0x214   : > { %v5176_v41 = vmul.f32 %v6589_v35, %v7850_v29  ;;  %v6591_v42 = vadd.f32 %v4885_v57, %v7837_v23  ;;  %vm5133_vm5 = vcmp.ge.f32.partialorder %v6589_v35, 0.0 }
 0x215   : > { %vm5136_vm6 = vcmp.ge.f32.partialorder %v6590_v7, 0.0  ;;  %v5179_v19 = vmul.f32 %v6590_v7, %v7850_v29  ;;  %v5214_v45 = vsel %vm5135_vm4, %v6588_v33, %v5178_v39 }
 0x216   : > { %vm5134_vm7 = vcmp.ge.f32.partialorder %v6591_v42, 0.0  ;;  %v5177_v44 = vmul.f32 %v6591_v42, %v7850_v29  ;;  %v5212_v23 = vsel %vm5133_vm5, %v6589_v35, %v5176_v41 }
 0x217   : > { %v5215_v46 = vsel %vm5136_vm6, %v6590_v7, %v5179_v19 }
 0x218   : > { %v7893_v43 = vpop.f32.mrb[24].mxu1  ;;  %v5992_v48 = vpack.c.bf16 %v5215_v46, %v5214_v45  ;;  %v5213_v49 = vsel %vm5134_vm7, %v6591_v42, %v5177_v44  ;;  %v6556_v50 = vpop.f32.mrb[16].mxu0 }
 0x219   : > { %v7896_v20 = vpop.f32.mrb[25].mxu1  ;;  %v5987_v51 = vpack.c.bf16 %v5213_v49, %v5212_v23  ;;  %v6592_v52 = vadd.f32 %v6556_v50, %v7839_v24  ;;  %v4898_v53 = vpop.f32.mrb[17].mxu0 }
 0x21a   : > { %v7899_v21 = vpop.f32.mrb[26].mxu1  ;;  %6050 = vst [vmem:[%s7859_s11 + $0x38] sm:$0xff] %v5992_v48   ;;  %v6593_v54 = vadd.f32 %v4898_v53, %v7841_v25  ;;  %v6557_v55 = vpop.f32.mrb[18].mxu0 }
 0x21b   : > { %v7901_v47 = vpop.f32.mrb[27].mxu1  ;;  %6049 = vst [vmem:[%s7859_s11 + $0x30] sm:$0xff] %v5987_v51   ;;  %v5182_v56 = vmul.f32 %v6592_v52, %v7850_v29  ;;  %v6594_v58 = vadd.f32 %v6557_v55, %v7843_v26  ;;  %v4901_v59 = vpop.f32.mrb[19].mxu0  ;;  %vm5139_vm8 = vcmp.ge.f32.partialorder %v6592_v52, 0.0 }
 0x21c   : > { %v5180_v40 = vmul.f32 %v6593_v54, %v7850_v29  ;;  %v6595_v60 = vadd.f32 %v4901_v59, %v7845_v27  ;;  %vm5137_vm9 = vcmp.ge.f32.partialorder %v6593_v54, 0.0 }
 0x21d   : > { %vm5140_vm10 = vcmp.ge.f32.partialorder %v6594_v58, 0.0  ;;  %v5183_v24 = vmul.f32 %v6594_v58, %v7850_v29  ;;  %v5218_v63 = vsel %vm5139_vm8, %v6592_v52, %v5182_v56 }
 0x21e   : > { %vm5138_vm11 = vcmp.ge.f32.partialorder %v6595_v60, 0.0  ;;  %v5181_v62 = vmul.f32 %v6595_v60, %v7850_v29  ;;  %v5216_v27 = vsel %vm5137_vm9, %v6593_v54, %v5180_v40 }
 0x21f   : > { %v5219_v3 = vsel %vm5140_vm10, %v6594_v58, %v5183_v24 }
 0x220   : > { %v7911_v61 = vpop.f32.mrb[28].mxu1  ;;  %v6002_v38 = vpack.c.bf16 %v5219_v3, %v5218_v63  ;;  %v5217_v1 = vsel %vm5138_vm11, %v6595_v60, %v5181_v62  ;;  %v6560_v2 = vpop.f32.mrb[20].mxu0 }
 0x221   : > { %v7914_v25 = vpop.f32.mrb[29].mxu1  ;;  %v5997_v4 = vpack.c.bf16 %v5217_v1, %v5216_v27  ;;  %v6596_v5 = vadd.f32 %v6560_v2, %v7875_v11  ;;  %v4914_v6 = vpop.f32.mrb[21].mxu0 }
 0x222   : > { %v7917_v26 = vpop.f32.mrb[30].mxu1  ;;  %6052 = vst [vmem:[%s7859_s11 + $0x48] sm:$0xff] %v6002_v38   ;;  %v6597_v8 = vadd.f32 %v4914_v6, %v7878_v13  ;;  %v6561_v36 = vpop.f32.mrb[22].mxu0 }
 0x223   : > { %v7919_v0 = vpop.f32.mrb[31].mxu1  ;;  %6051 = vst [vmem:[%s7859_s11 + $0x40] sm:$0xff] %v5997_v4   ;;  %v5186_v9 = vmul.f32 %v6596_v5, %v7850_v29  ;;  %v6598_v10 = vadd.f32 %v6561_v36, %v7881_v15  ;;  %v4917_v12 = vpop.f32.mrb[23].mxu0  ;;  %vm5143_vm12 = vcmp.ge.f32.partialorder %v6596_v5, 0.0 }
 0x224   : > { %v5184_v14 = vmul.f32 %v6597_v8, %v7850_v29  ;;  %v6599_v16 = vadd.f32 %v4917_v12, %v7883_v17  ;;  %vm5141_vm13 = vcmp.ge.f32.partialorder %v6597_v8, 0.0 }
 0x225   : > { %vm5144_vm14 = vcmp.ge.f32.partialorder %v6598_v10, 0.0  ;;  %v5187_v11 = vmul.f32 %v6598_v10, %v7850_v29  ;;  %v5222_v28 = vsel %vm5143_vm12, %v6596_v5, %v5186_v9 }
 0x226   : > { %vm5142_vm15 = vcmp.ge.f32.partialorder %v6599_v16, 0.0  ;;  %v5185_v18 = vmul.f32 %v6599_v16, %v7850_v29  ;;  %v5220_v17 = vsel %vm5141_vm13, %v6597_v8, %v5184_v14 }
 0x227   : > { %v5223_v30 = vsel %vm5144_vm14, %v6598_v10, %v5187_v11 }
 0x228   : > { %v7929_v22 = vpop.f32.mrb[32].mxu1  ;;  %v6012_v32 = vpack.c.bf16 %v5223_v30, %v5222_v28  ;;  %v5221_v33 = vsel %vm5142_vm15, %v6599_v16, %v5185_v18  ;;  %v6564_v34 = vpop.f32.mrb[24].mxu0 }
 0x229   : > { %v7932_v13 = vpop.f32.mrb[33].mxu1  ;;  %v6007_v35 = vpack.c.bf16 %v5221_v33, %v5220_v17  ;;  %v6600_v37 = vadd.f32 %v6564_v34, %v7893_v43  ;;  %v4930_v39 = vpop.f32.mrb[25].mxu0 }
 0x22a   : > { %v7935_v15 = vpop.f32.mrb[34].mxu1  ;;  %6054 = vst [vmem:[%s7859_s11 + $0x58] sm:$0xff] %v6012_v32   ;;  %v6601_v7 = vadd.f32 %v4930_v39, %v7896_v20  ;;  %v6565_v57 = vpop.f32.mrb[26].mxu0 }
 0x22b   : > { %v7937_v31 = vpop.f32.mrb[35].mxu1  ;;  %6053 = vst [vmem:[%s7859_s11 + $0x50] sm:$0xff] %v6007_v35   ;;  %v5190_v41 = vmul.f32 %v6600_v37, %v7850_v29  ;;  %v6602_v42 = vadd.f32 %v6565_v57, %v7899_v21  ;;  %v4933_v19 = vpop.f32.mrb[27].mxu0  ;;  %vm5147_vm0 = vcmp.ge.f32.partialorder %v6600_v37, 0.0 }
 0x22c   : > { %v5188_v44 = vmul.f32 %v6601_v7, %v7850_v29  ;;  %v6603_v45 = vadd.f32 %v4933_v19, %v7901_v47  ;;  %vm5145_vm1 = vcmp.ge.f32.partialorder %v6601_v7, 0.0 }
 0x22d   : > { %vm5148_vm2 = vcmp.ge.f32.partialorder %v6602_v42, 0.0  ;;  %v5191_v43 = vmul.f32 %v6602_v42, %v7850_v29  ;;  %v5226_v46 = vsel %vm5147_vm0, %v6600_v37, %v5190_v41 }
 0x22e   : > { %vm5146_vm3 = vcmp.ge.f32.partialorder %v6603_v45, 0.0  ;;  %v5189_v20 = vmul.f32 %v6603_v45, %v7850_v29  ;;  %v5224_v48 = vsel %vm5145_vm1, %v6601_v7, %v5188_v44 }
 0x22f   : > { %v5227_v23 = vsel %vm5148_vm2, %v6602_v42, %v5191_v43 }
 0x230   : > { %v6022_v49 = vpack.c.bf16 %v5227_v23, %v5226_v46  ;;  %v5225_v21 = vsel %vm5146_vm3, %v6603_v45, %v5189_v20  ;;  %v6568_v50 = vpop.f32.mrb[28].mxu0 }
 0x231   : > { %v6017_v51 = vpack.c.bf16 %v5225_v21, %v5224_v48  ;;  %v6604_v52 = vadd.f32 %v6568_v50, %v7911_v61  ;;  %v4946_v53 = vpop.f32.mrb[29].mxu0 }
 0x232   : > { %6056 = vst [vmem:[%s7859_s11 + $0x68] sm:$0xff] %v6022_v49   ;;  %v6605_v47 = vadd.f32 %v4946_v53, %v7914_v25  ;;  %v6569_v54 = vpop.f32.mrb[30].mxu0 }
 0x233   : > { %6055 = vst [vmem:[%s7859_s11 + $0x60] sm:$0xff] %v6017_v51   ;;  %v5194_v55 = vmul.f32 %v6604_v52, %v7850_v29  ;;  %v6606_v56 = vadd.f32 %v6569_v54, %v7917_v26  ;;  %v4949_v58 = vpop.f32.mrb[31].mxu0  ;;  %vm5151_vm4 = vcmp.ge.f32.partialorder %v6604_v52, 0.0 }
 0x234   : > { %v5192_v59 = vmul.f32 %v6605_v47, %v7850_v29  ;;  %v6607_v40 = vadd.f32 %v4949_v58, %v7919_v0  ;;  %vm5149_vm5 = vcmp.ge.f32.partialorder %v6605_v47, 0.0 }
 0x235   : > { %vm5152_vm6 = vcmp.ge.f32.partialorder %v6606_v56, 0.0  ;;  %v5195_v60 = vmul.f32 %v6606_v56, %v7850_v29  ;;  %v5230_v24 = vsel %vm5151_vm4, %v6604_v52, %v5194_v55 }
 0x236   : > { %vm5150_vm7 = vcmp.ge.f32.partialorder %v6607_v40, 0.0  ;;  %v5193_v61 = vmul.f32 %v6607_v40, %v7850_v29  ;;  %v5228_v62 = vsel %vm5149_vm5, %v6605_v47, %v5192_v59 }
 0x237   : > { %v5231_v25 = vsel %vm5152_vm6, %v6606_v56, %v5195_v60 }
 0x238   : > { %v6032_v63 = vpack.c.bf16 %v5231_v25, %v5230_v24  ;;  %v5229_v26 = vsel %vm5150_vm7, %v6607_v40, %v5193_v61  ;;  %v6572_v3 = vpop.f32.mrb[32].mxu0 }
 0x239   : > { %v6027_v27 = vpack.c.bf16 %v5229_v26, %v5228_v62  ;;  %v6608_v38 = vadd.f32 %v6572_v3, %v7929_v22  ;;  %v4962_v0 = vpop.f32.mrb[33].mxu0 }
 0x23a   : > { %6058 = vst [vmem:[%s7859_s11 + $0x78] sm:$0xff] %v6032_v63   ;;  %v6609_v1 = vadd.f32 %v4962_v0, %v7932_v13  ;;  %v6573_v2 = vpop.f32.mrb[34].mxu0 }
 0x23b   : > { %6057 = vst [vmem:[%s7859_s11 + $0x70] sm:$0xff] %v6027_v27   ;;  %v5198_v4 = vmul.f32 %v6608_v38, %v7850_v29  ;;  %v6610_v5 = vadd.f32 %v6573_v2, %v7935_v15  ;;  %v4965_v6 = vpop.f32.mrb[35].mxu0  ;;  %vm5155_vm8 = vcmp.ge.f32.partialorder %v6608_v38, 0.0 }
 0x23c   : > { %v5196_v8 = vmul.f32 %v6609_v1, %v7850_v29  ;;  %v6611_v36 = vadd.f32 %v4965_v6, %v7937_v31  ;;  %vm5153_vm9 = vcmp.ge.f32.partialorder %v6609_v1, 0.0 }
 0x23d   : > { %vm5156_vm10 = vcmp.ge.f32.partialorder %v6610_v5, 0.0  ;;  %v5199_v9 = vmul.f32 %v6610_v5, %v7850_v29  ;;  %v5234_v12 = vsel %vm5155_vm8, %v6608_v38, %v5198_v4 }
 0x23e   : > { %vm5154_vm11 = vcmp.ge.f32.partialorder %v6611_v36, 0.0  ;;  %v5197_v10 = vmul.f32 %v6611_v36, %v7850_v29  ;;  %v5232_v16 = vsel %vm5153_vm9, %v6609_v1, %v5196_v8 }
 0x23f   : > { %v5235_v14 = vsel %vm5156_vm10, %v6610_v5, %v5199_v9 }
 0x240   : > { %v6042_v22 = vpack.c.bf16 %v5235_v14, %v5234_v12  ;;  %v5233_v11 = vsel %vm5154_vm11, %v6611_v36, %v5197_v10 }
 0x241   : > { %v6037_v13 = vpack.c.bf16 %v5233_v11, %v5232_v16 }
 0x242   : > { %6060 = vst [vmem:[%s7859_s11 + $0x88] sm:$0xff] %v6042_v22  }
 0x243   : > { %6059 = vst [vmem:[%s7859_s11 + $0x80] sm:$0xff] %v6037_v13  }
 0x244   : > { %7118 = shalt.err (!%p7115_p5)
}
 0x245   : > { %s7119_s4 = scalar_lea.hbm %s7974_s15, 2304  ;;  %s7123_s7 = scalar_lea.hbm %s8031_s3, 4608 }
 0x246   : > { %p7120_p6 = scmp.ne.s32.totalorder %s7974_s15, %s7119_s4  ;;  %p7124_p10 = scmp.lt.u32.totalorder %s7974_s15, %s8031_s3 }
 0x247   : > { %p7125_p11 = scmp.lt.u32.totalorder %s7123_s7, %s7119_s4  ;;  %p7127_p13 = scmp.lt.u32.totalorder %s7119_s4, %s7974_s15 }
 0x248   : > { %p7121_p7 = pnand %p7120_p6, %p7248_p4 }
 0x249   : > { %p7126_p12 = por %p7125_p11, %p7124_p10 }
 0x24a   : > { %p7122_p9 = pneg %p7121_p7 }
 0x24b   : > { %p7128_p0 = por %p7127_p13, %p7126_p12 }
 0x24d   : > { %p7129_p1 = pnand %p7128_p0, %p7122_p9 }
 0x24f   : > { %7132 = shalt.err (!%p7129_p1)
}
 0x250   : > { %s7186_s10 = smov 64   ;;  %s7187_s11 = smov 4  }
 0x251   : > { %6877 = dma.vmem_to_hbm [thread:$0]  (%p7248_p4), %s7976_s19, 2304, %s7974_s15, %s7982_s26, %s7186_s10, %s7186_s10, %s7187_s11  }
 0x252 PF: > { %p6883_p2 = scmp.ge.s32.totalorder %s7183_s17, 2  ;;  %s5446_s18 = sand.u32 1, %s7163_s12  }
 0x253   : > { %s5447_s21 = scalar_lea.sflag [#allocation4], %s5446_s18 }
 0x254   : > { %p6880_p3 = pnand %p6883_p2, %p7255_p8 }
 0x256   : > { %7158 = dma.done.wait (!%p6880_p3), %s5447_s21, 2304  }
 0x257   : > { %7160 = vsyncadd (!%p6880_p3), %s5447_s21, 4294964992  ;;  %s16_s17 = sadd.s32 1, %s7183_s17   ;;  %s8034_s12 = smov %s7167_s13 }
 0x258   : > { %p13_p5 = scmp.ge.s32.totalorder %s16_s17, 4   ;;  %s8035_s13 = smov %s7171_s14 }
 0x259   : > { %s8036_s14 = smov %s7261_s25  ;;  %s8037_s15 = smov %s7179_s16 }
 0x25a   : > { %s8038_s16 = smov %s8040_s20  ;;  %15 = sbr.rel (!%p13_p5) target bundleno = 4 (0x4), region = 81 }
 0x261   :  { %5452 = vsyncpa [#allocation4], 1 }
 0x262   :  { %5454 = vsyncpa [#allocation4 + $0x1], 1 }

</bundles_post_ra>
